<compile_context>
chip_gen: v5e
topology: v5e:2x2
jax: 0.10.0
libtpu: 0.0.40
codegen_flags: <defaults>
</compile_context>

<pallas_src>
import math
import functools

import jax
import jax.numpy as jnp
from jax.experimental import pallas as pl
from jax.experimental.pallas import tpu as pltpu


def _round_up(x: int, m: int) -> int:
    return ((x + m - 1) // m) * m


def _vmem_limit_bytes() -> int:
    """VMEM budget from the actual chip (64 MiB physical on v7x, 128 MiB on
    v5e/v6e), leaving headroom for compiler scratch / semaphores."""
    cap = 128 * 1024 * 1024
    try:
        info = pltpu.get_tpu_info()
        cap = int(getattr(info, "vmem_capacity_bytes", cap))
    except Exception:
        pass
    return min((cap * 3) // 4, 100 * 1024 * 1024)


# -----------------------------------------------------------------------------
# Kernel 1: fused QKV projection, emitted head-major.
#   Each token is projected exactly once; Q is pre-scaled by 1/sqrt(hd); the
#   (tq, C) -> (H, tq, hd) relayout is paid once here instead of per KV step.
# -----------------------------------------------------------------------------
def _qkv_proj_kernel(x_ref, wk_ref, wq_ref, wv_ref, bk_ref, bq_ref, bv_ref,
                     q_ref, k_ref, v_ref, *, n_heads: int, head_dim: int,
                     q_scale: float):
    x = x_ref[0]                                   # (tq, C) bf16
    tq = x.shape[0]
    H, hd = n_heads, head_dim

    def proj(w_ref, b_ref, scale):
        y = jnp.dot(x, w_ref[...], preferred_element_type=jnp.float32)
        y = y + b_ref[0]
        if scale != 1.0:
            y = y * jnp.float32(scale)
        # (tq, C) -> head-major (H, tq, hd)
        return jnp.transpose(y.reshape(tq, H, hd), (1, 0, 2)).astype(jnp.bfloat16)

    q_ref[0] = proj(wq_ref, bq_ref, q_scale)
    k_ref[0] = proj(wk_ref, bk_ref, 1.0)
    v_ref[0] = proj(wv_ref, bv_ref, 1.0)


# -----------------------------------------------------------------------------
# Kernel 2: causal flash attention (online softmax over KV tiles) fused with
# the output projection.  Grid (B, nq, nk); nk innermost ("arbitrary").
# -----------------------------------------------------------------------------
def _flash_attn_kernel(q_ref, k_ref, v_ref, wproj_ref, bproj_ref, o_ref,
                       m_ref, l_ref, acc_ref, *, tq: int, tk: int):
    qi = pl.program_id(1)
    ki = pl.program_id(2)

    @pl.when(ki == 0)
    def _init():
        m_ref[...] = jnp.full_like(m_ref, -1e30)
        l_ref[...] = jnp.zeros_like(l_ref)
        acc_ref[...] = jnp.zeros_like(acc_ref)

    # Skip KV blocks entirely above the causal diagonal (their DMA is already
    # elided by the clamped index_map; this skips their compute).
    @pl.when(ki * tk <= qi * tq + (tq - 1))
    def _step():
        qh = q_ref[0]                              # (H, tq, hd) bf16, pre-scaled
        kh = k_ref[0]                              # (H, tk, hd) bf16
        vh = v_ref[0]                              # (H, tk, hd) bf16

        # All heads in one batched MXU stream, f32 accumulation.
        s = jnp.einsum('hqd,hkd->hqk', qh, kh,
                       preferred_element_type=jnp.float32)      # (H, tq, tk)

        # Causal mask (only the diagonal block is actually partial; cheap VPU).
        row = jax.lax.broadcasted_iota(jnp.int32, (tq, tk), 0) + qi * tq
        col = jax.lax.broadcasted_iota(jnp.int32, (tq, tk), 1) + ki * tk
        s = jnp.where((row >= col)[None, :, :], s, jnp.float32(-1e30))

        # Online softmax update.
        m_prev = m_ref[...]                                      # (H, tq, 1)
        m_new = jnp.maximum(m_prev, jnp.max(s, axis=-1, keepdims=True))
        alpha = jnp.exp(m_prev - m_new)
        p = jnp.exp(s - m_new)                                   # (H, tq, tk) f32
        l_ref[...] = alpha * l_ref[...] + jnp.sum(p, axis=-1, keepdims=True)
        acc_ref[...] = alpha * acc_ref[...] + jnp.einsum(
            'hqk,hkd->hqd', p.astype(jnp.bfloat16), vh,
            preferred_element_type=jnp.float32)
        m_ref[...] = m_new

    @pl.when(ki == pl.num_programs(2) - 1)
    def _finalize():
        H, tq_, hd = acc_ref.shape
        # Normalize (EUP reciprocal), merge heads, output projection.
        out_h = acc_ref[...] * pl.reciprocal(l_ref[...], approx=True)
        out_cat = jnp.transpose(out_h, (1, 0, 2)).reshape(tq_, H * hd)
        out_cat = out_cat.astype(jnp.bfloat16)
        proj = jnp.dot(out_cat, wproj_ref[...],
                       preferred_element_type=jnp.float32) + bproj_ref[0]
        o_ref[0] = proj.astype(o_ref.dtype)


def multi_head_attention(x, w_qkv, b_qkv, w_proj, b_proj, *, n_heads: int,
                         q_block: int = 128):
    """Causal MHA matching the PyTorch module (eval mode).

    x: (B, T, C); w_qkv: (C, 3C) with column layout [k | q | v]; b_qkv: (3C,);
    w_proj: (C, C); b_proj: (C,).
    """
    B, T, C = x.shape
    assert C % n_heads == 0
    hd = C // n_heads
    out_dtype = x.dtype

    # Tile sizes.  q_block=128 matches v5e's MXU; on v6e/v7x pass q_block=256
    # to fill the 256-wide MXU.  Short/ragged T is zero-padded: padded keys are
    # masked by causality, padded query rows are sliced off at the end.
    tq = q_block if T >= q_block else _round_up(T, 8)
    T_pad = _round_up(T, tq)
    tk = tq
    nq = T_pad // tq
    nk = T_pad // tk

    if T_pad != T:
        x = jnp.pad(x, ((0, 0), (0, T_pad - T), (0, 0)))

    # Split the fused QKV weight (module split order: k, q, v).
    w_k = w_qkv[:, 0 * C:1 * C].astype(jnp.bfloat16)
    w_q = w_qkv[:, 1 * C:2 * C].astype(jnp.bfloat16)
    w_v = w_qkv[:, 2 * C:3 * C].astype(jnp.bfloat16)
    b_k = b_qkv[0 * C:1 * C].reshape(1, C).astype(jnp.float32)
    b_q = b_qkv[1 * C:2 * C].reshape(1, C).astype(jnp.float32)
    b_v = b_qkv[2 * C:3 * C].reshape(1, C).astype(jnp.float32)
    w_proj_bf = w_proj.astype(jnp.bfloat16)
    b_proj2 = b_proj.reshape(1, C).astype(jnp.float32)
    x_bf = x.astype(jnp.bfloat16)

    vmem_limit = _vmem_limit_bytes()

    def run(single_buffer_weights: bool):
        def wspec(shape, index_map):
            # Constant-index weights: single-buffer so default double-buffering
            # doesn't double their resident footprint.
            if single_buffer_weights:
                return pl.BlockSpec(shape, index_map, pipeline_mode=pl.Buffered(1))
            return pl.BlockSpec(shape, index_map)

        # ---- Pass 1: QKV projection (once per token), head-major bf16. -----
        proj_kernel = functools.partial(
            _qkv_proj_kernel, n_heads=n_heads, head_dim=hd,
            q_scale=1.0 / math.sqrt(hd))
        q_hm, k_hm, v_hm = pl.pallas_call(
            proj_kernel,
            out_shape=tuple(
                jax.ShapeDtypeStruct((B, n_heads, T_pad, hd), jnp.bfloat16)
                for _ in range(3)),
            grid_spec=pltpu.PrefetchScalarGridSpec(
                num_scalar_prefetch=0,
                grid=(B, nq),
                in_specs=[
                    pl.BlockSpec((1, tq, C), lambda b, i: (b, i, 0)),   # x tile
                    wspec((C, C), lambda b, i: (0, 0)),                 # W_k
                    wspec((C, C), lambda b, i: (0, 0)),                 # W_q
                    wspec((C, C), lambda b, i: (0, 0)),                 # W_v
                    wspec((1, C), lambda b, i: (0, 0)),                 # b_k
                    wspec((1, C), lambda b, i: (0, 0)),                 # b_q
                    wspec((1, C), lambda b, i: (0, 0)),                 # b_v
                ],
                out_specs=tuple(
                    pl.BlockSpec((1, n_heads, tq, hd), lambda b, i: (b, 0, i, 0))
                    for _ in range(3)),
            ),
            compiler_params=pltpu.CompilerParams(
                dimension_semantics=("parallel", "parallel"),
                vmem_limit_bytes=vmem_limit,
            ),
        )(x_bf, w_k, w_q, w_v, b_k, b_q, b_v)

        # ---- Pass 2: flash attention + output projection. -------------------
        attn_kernel = functools.partial(_flash_attn_kernel, tq=tq, tk=tk)

        def kv_idx(b, qi, ki):
            # Above-diagonal KV blocks map to the last needed block so the
            # pipeline skips their DMA (unchanged block index => no copy).
            return (b, 0, jnp.minimum(ki, qi), 0)

        out = pl.pallas_call(
            attn_kernel,
            out_shape=jax.ShapeDtypeStruct((B, T_pad, C), out_dtype),
            grid_spec=pltpu.PrefetchScalarGridSpec(
                num_scalar_prefetch=0,
                grid=(B, nq, nk),
                in_specs=[
                    pl.BlockSpec((1, n_heads, tq, hd),
                                 lambda b, qi, ki: (b, 0, qi, 0)),       # Q
                    pl.BlockSpec((1, n_heads, tk, hd), kv_idx),          # K
                    pl.BlockSpec((1, n_heads, tk, hd), kv_idx),          # V
                    wspec((C, C), lambda b, qi, ki: (0, 0)),             # W_proj
                    wspec((1, C), lambda b, qi, ki: (0, 0)),             # b_proj
                ],
                out_specs=pl.BlockSpec((1, tq, C), lambda b, qi, ki: (b, qi, 0)),
                scratch_shapes=[
                    pltpu.VMEM((n_heads, tq, 1), jnp.float32),   # running max
                    pltpu.VMEM((n_heads, tq, 1), jnp.float32),   # running denom
                    pltpu.VMEM((n_heads, tq, hd), jnp.float32),  # running PV acc
                ],
            ),
            compiler_params=pltpu.CompilerParams(
                dimension_semantics=("parallel", "parallel", "arbitrary"),
                vmem_limit_bytes=vmem_limit,
            ),
        )(q_hm, k_hm, v_hm, w_proj_bf, b_proj2)
        return out

    try:
        out = jax.block_until_ready(run(True))
    except Exception:
        # Fallback if this JAX build rejects pipeline_mode=pl.Buffered(1).
        out = run(False)

    if T_pad != T:
        out = out[:, :T, :]
    return out


def _reference(x, w_qkv, b_qkv, w_proj, b_proj, n_heads):
    B, T, C = x.shape
    hd = C // n_heads
    qkv = x @ w_qkv + b_qkv
    k, q, v = jnp.split(qkv, 3, axis=-1)
    def heads(t):  # (B, T, C) -> (B, H, T, hd)
        return t.reshape(B, T, n_heads, hd).transpose(0, 2, 1, 3)
    k, q, v = heads(k), heads(q), heads(v)
    wei = (q @ jnp.swapaxes(k, -2, -1)) * (1.0 / math.sqrt(hd))
    mask = jnp.tril(jnp.ones((T, T), dtype=bool))
    wei = jnp.where(mask[None, None], wei, -jnp.inf)
    wei = jax.nn.softmax(wei, axis=-1)
    out = wei @ v
    out = out.transpose(0, 2, 1, 3).reshape(B, T, C)
    return out @ w_proj + b_proj


if __name__ == "__main__":
    # Small, deterministic config.
    B, T = 2, 8
    n_embeds, n_heads = 32, 4
    block_size = 16          # >= T (only the causal mask matters)
    dropout = 0.1            # identity in eval mode

    key = jax.random.PRNGKey(0)
    kx, k1, k2, k3, k4 = jax.random.split(key, 5)

    x = jax.random.normal(kx, (B, T, n_embeds), dtype=jnp.float32)

    # Deterministic parameter init (shapes from the module's __init__,
    # weights pre-transposed to (in, out)).
    w_qkv = jax.random.normal(k1, (n_embeds, 3 * n_embeds), jnp.float32) * 0.05
    b_qkv = jax.random.normal(k2, (3 * n_embeds,), jnp.float32) * 0.05
    w_proj = jax.random.normal(k3, (n_embeds, n_embeds), jnp.float32) * 0.05
    b_proj = jax.random.normal(k4, (n_embeds,), jnp.float32) * 0.05

    out = multi_head_attention(x, w_qkv, b_qkv, w_proj, b_proj, n_heads=n_heads)
    out = jax.block_until_ready(out)

    ref = _reference(x, w_qkv, b_qkv, w_proj, b_proj, n_heads)
    assert out.shape == (B, T, n_embeds)
    err = float(jnp.max(jnp.abs(out - ref)))
    # bf16 matmul operands + approx reciprocal -> relaxed (but tight) tolerance.
    assert jnp.allclose(out, ref, atol=2e-2, rtol=2e-2), err

    print("KERNEL_OK")
</pallas_src>

<mosaic_0001>
module attributes {stable_mosaic.version = 11 : i64} {
  func.func @_qkv_proj_kernel(%arg0: i32, %arg1: i32, %arg2: memref<1x8x32xbf16, #tpu.memory_space<vmem>>, %arg3: memref<32x32xbf16, #tpu.memory_space<vmem>>, %arg4: memref<32x32xbf16, #tpu.memory_space<vmem>>, %arg5: memref<32x32xbf16, #tpu.memory_space<vmem>>, %arg6: memref<1x32xf32, #tpu.memory_space<vmem>>, %arg7: memref<1x32xf32, #tpu.memory_space<vmem>>, %arg8: memref<1x32xf32, #tpu.memory_space<vmem>>, %arg9: memref<1x4x8x8xbf16, #tpu.memory_space<vmem>>, %arg10: memref<1x4x8x8xbf16, #tpu.memory_space<vmem>>, %arg11: memref<1x4x8x8xbf16, #tpu.memory_space<vmem>>) attributes {dimension_semantics = [#tpu.dimension_semantics<parallel>, #tpu.dimension_semantics<parallel>], iteration_bounds = array<i64: 2, 1>, scalar_prefetch = 0 : i64, scratch_operands = 0 : i64, tpu.core_type = #tpu.core_type<tc>, window_params = [{transform_indices = @transform_0, window_bounds = array<i64: 1, 8, 32>}, {pipeline_mode = #tpu.pipeline_mode<synchronous>, transform_indices = @transform_1, window_bounds = array<i64: 32, 32>}, {pipeline_mode = #tpu.pipeline_mode<synchronous>, transform_indices = @transform_2, window_bounds = array<i64: 32, 32>}, {pipeline_mode = #tpu.pipeline_mode<synchronous>, transform_indices = @transform_3, window_bounds = array<i64: 32, 32>}, {pipeline_mode = #tpu.pipeline_mode<synchronous>, transform_indices = @transform_4, window_bounds = array<i64: 1, 32>}, {pipeline_mode = #tpu.pipeline_mode<synchronous>, transform_indices = @transform_5, window_bounds = array<i64: 1, 32>}, {pipeline_mode = #tpu.pipeline_mode<synchronous>, transform_indices = @transform_6, window_bounds = array<i64: 1, 32>}, {transform_indices = @transform_7, window_bounds = array<i64: 1, 4, 8, 8>}, {transform_indices = @transform_8, window_bounds = array<i64: 1, 4, 8, 8>}, {transform_indices = @transform_9, window_bounds = array<i64: 1, 4, 8, 8>}]} {
    %c0 = arith.constant 0 : index
    %c0_0 = arith.constant 0 : index
    %c0_1 = arith.constant 0 : index
    %0 = vector.load %arg2[%c0, %c0_0, %c0_1] : memref<1x8x32xbf16, #tpu.memory_space<vmem>>, vector<1x8x32xbf16>
    %1 = vector.shape_cast %0 : vector<1x8x32xbf16> to vector<8x32xbf16>
    %c0_2 = arith.constant 0 : index
    %c0_3 = arith.constant 0 : index
    %2 = vector.load %arg4[%c0_2, %c0_3] : memref<32x32xbf16, #tpu.memory_space<vmem>>, vector<32x32xbf16>
    %cst = arith.constant dense<0.000000e+00> : vector<8x32xf32>
    %3 = tpu.matmul %1, %2, %cst {dimension_numbers = #tpu.dot_dimension_numbers<[1], [0], [0], [1], [0, 0, 1, 1], [], []>} : vector<8x32xbf16>, vector<32x32xbf16>, vector<8x32xf32> -> vector<8x32xf32>
    %c0_4 = arith.constant 0 : index
    %c0_5 = arith.constant 0 : index
    %4 = vector.load %arg7[%c0_4, %c0_5] : memref<1x32xf32, #tpu.memory_space<vmem>>, vector<1x32xf32>
    %5 = vector.shape_cast %4 : vector<1x32xf32> to vector<32xf32>
    %6 = vector.shape_cast %5 : vector<32xf32> to vector<1x32xf32>
    %7 = vector.broadcast %6 : vector<1x32xf32> to vector<8x32xf32>
    %8 = arith.addf %3, %7 : vector<8x32xf32>
    %cst_6 = arith.constant 0.353553385 : f32
    %9 = vector.broadcast %cst_6 : f32 to vector<8x32xf32>
    %10 = arith.mulf %8, %9 : vector<8x32xf32>
    %11 = vector.shape_cast %10 : vector<8x32xf32> to vector<8x4x8xf32>
    %12 = tpu.transpose %11, [1, 0, 2] : vector<8x4x8xf32> -> vector<4x8x8xf32>
    %13 = arith.truncf %12 : vector<4x8x8xf32> to vector<4x8x8xbf16>
    %c0_7 = arith.constant 0 : index
    %c0_8 = arith.constant 0 : index
    %c0_9 = arith.constant 0 : index
    %c0_10 = arith.constant 0 : index
    %14 = vector.load %arg9[%c0_7, %c0_8, %c0_9, %c0_10] : memref<1x4x8x8xbf16, #tpu.memory_space<vmem>>, vector<1x4x8x8xbf16>
    %15 = vector.shape_cast %14 : vector<1x4x8x8xbf16> to vector<4x8x8xbf16>
    %16 = vector.shape_cast %13 : vector<4x8x8xbf16> to vector<1x4x8x8xbf16>
    tpu.vector_store %arg9[%c0_7, %c0_8, %c0_9, %c0_10], %16 {strides = array<i32>} : memref<1x4x8x8xbf16, #tpu.memory_space<vmem>>, vector<1x4x8x8xbf16>,
    %c0_11 = arith.constant 0 : index
    %c0_12 = arith.constant 0 : index
    %17 = vector.load %arg3[%c0_11, %c0_12] : memref<32x32xbf16, #tpu.memory_space<vmem>>, vector<32x32xbf16>
    %cst_13 = arith.constant dense<0.000000e+00> : vector<8x32xf32>
    %18 = tpu.matmul %1, %17, %cst_13 {dimension_numbers = #tpu.dot_dimension_numbers<[1], [0], [0], [1], [0, 0, 1, 1], [], []>} : vector<8x32xbf16>, vector<32x32xbf16>, vector<8x32xf32> -> vector<8x32xf32>
    %c0_14 = arith.constant 0 : index
    %c0_15 = arith.constant 0 : index
    %19 = vector.load %arg6[%c0_14, %c0_15] : memref<1x32xf32, #tpu.memory_space<vmem>>, vector<1x32xf32>
    %20 = vector.shape_cast %19 : vector<1x32xf32> to vector<32xf32>
    %21 = vector.shape_cast %20 : vector<32xf32> to vector<1x32xf32>
    %22 = vector.broadcast %21 : vector<1x32xf32> to vector<8x32xf32>
    %23 = arith.addf %18, %22 : vector<8x32xf32>
    %24 = vector.shape_cast %23 : vector<8x32xf32> to vector<8x4x8xf32>
    %25 = tpu.transpose %24, [1, 0, 2] : vector<8x4x8xf32> -> vector<4x8x8xf32>
    %26 = arith.truncf %25 : vector<4x8x8xf32> to vector<4x8x8xbf16>
    %c0_16 = arith.constant 0 : index
    %c0_17 = arith.constant 0 : index
    %c0_18 = arith.constant 0 : index
    %c0_19 = arith.constant 0 : index
    %27 = vector.load %arg10[%c0_16, %c0_17, %c0_18, %c0_19] : memref<1x4x8x8xbf16, #tpu.memory_space<vmem>>, vector<1x4x8x8xbf16>
    %28 = vector.shape_cast %27 : vector<1x4x8x8xbf16> to vector<4x8x8xbf16>
    %29 = vector.shape_cast %26 : vector<4x8x8xbf16> to vector<1x4x8x8xbf16>
    tpu.vector_store %arg10[%c0_16, %c0_17, %c0_18, %c0_19], %29 {strides = array<i32>} : memref<1x4x8x8xbf16, #tpu.memory_space<vmem>>, vector<1x4x8x8xbf16>,
    %c0_20 = arith.constant 0 : index
    %c0_21 = arith.constant 0 : index
    %30 = vector.load %arg5[%c0_20, %c0_21] : memref<32x32xbf16, #tpu.memory_space<vmem>>, vector<32x32xbf16>
    %cst_22 = arith.constant dense<0.000000e+00> : vector<8x32xf32>
    %31 = tpu.matmul %1, %30, %cst_22 {dimension_numbers = #tpu.dot_dimension_numbers<[1], [0], [0], [1], [0, 0, 1, 1], [], []>} : vector<8x32xbf16>, vector<32x32xbf16>, vector<8x32xf32> -> vector<8x32xf32>
    %c0_23 = arith.constant 0 : index
    %c0_24 = arith.constant 0 : index
    %32 = vector.load %arg8[%c0_23, %c0_24] : memref<1x32xf32, #tpu.memory_space<vmem>>, vector<1x32xf32>
    %33 = vector.shape_cast %32 : vector<1x32xf32> to vector<32xf32>
    %34 = vector.shape_cast %33 : vector<32xf32> to vector<1x32xf32>
    %35 = vector.broadcast %34 : vector<1x32xf32> to vector<8x32xf32>
    %36 = arith.addf %31, %35 : vector<8x32xf32>
    %37 = vector.shape_cast %36 : vector<8x32xf32> to vector<8x4x8xf32>
    %38 = tpu.transpose %37, [1, 0, 2] : vector<8x4x8xf32> -> vector<4x8x8xf32>
    %39 = arith.truncf %38 : vector<4x8x8xf32> to vector<4x8x8xbf16>
    %c0_25 = arith.constant 0 : index
    %c0_26 = arith.constant 0 : index
    %c0_27 = arith.constant 0 : index
    %c0_28 = arith.constant 0 : index
    %40 = vector.load %arg11[%c0_25, %c0_26, %c0_27, %c0_28] : memref<1x4x8x8xbf16, #tpu.memory_space<vmem>>, vector<1x4x8x8xbf16>
    %41 = vector.shape_cast %40 : vector<1x4x8x8xbf16> to vector<4x8x8xbf16>
    %42 = vector.shape_cast %39 : vector<4x8x8xbf16> to vector<1x4x8x8xbf16>
    tpu.vector_store %arg11[%c0_25, %c0_26, %c0_27, %c0_28], %42 {strides = array<i32>} : memref<1x4x8x8xbf16, #tpu.memory_space<vmem>>, vector<1x4x8x8xbf16>,
    return
  }
  func.func @transform_0(%arg0: i32, %arg1: i32) -> (i32, i32, i32) {
    %c0_i32 = arith.constant 0 : i32
    %c0_i32_0 = arith.constant 0 : i32
    return %arg0, %arg1, %c0_i32 : i32, i32, i32
  }
  func.func @transform_1(%arg0: i32, %arg1: i32) -> (i32, i32) {
    %c0_i32 = arith.constant 0 : i32
    %c0_i32_0 = arith.constant 0 : i32
    %c0_i32_1 = arith.constant 0 : i32
    return %c0_i32, %c0_i32_0 : i32, i32
  }
  func.func @transform_2(%arg0: i32, %arg1: i32) -> (i32, i32) {
    %c0_i32 = arith.constant 0 : i32
    %c0_i32_0 = arith.constant 0 : i32
    %c0_i32_1 = arith.constant 0 : i32
    return %c0_i32, %c0_i32_0 : i32, i32
  }
  func.func @transform_3(%arg0: i32, %arg1: i32) -> (i32, i32) {
    %c0_i32 = arith.constant 0 : i32
    %c0_i32_0 = arith.constant 0 : i32
    %c0_i32_1 = arith.constant 0 : i32
    return %c0_i32, %c0_i32_0 : i32, i32
  }
  func.func @transform_4(%arg0: i32, %arg1: i32) -> (i32, i32) {
    %c0_i32 = arith.constant 0 : i32
    %c0_i32_0 = arith.constant 0 : i32
    %c0_i32_1 = arith.constant 0 : i32
    return %c0_i32, %c0_i32_0 : i32, i32
  }
  func.func @transform_5(%arg0: i32, %arg1: i32) -> (i32, i32) {
    %c0_i32 = arith.constant 0 : i32
    %c0_i32_0 = arith.constant 0 : i32
    %c0_i32_1 = arith.constant 0 : i32
    return %c0_i32, %c0_i32_0 : i32, i32
  }
  func.func @transform_6(%arg0: i32, %arg1: i32) -> (i32, i32) {
    %c0_i32 = arith.constant 0 : i32
    %c0_i32_0 = arith.constant 0 : i32
    %c0_i32_1 = arith.constant 0 : i32
    return %c0_i32, %c0_i32_0 : i32, i32
  }
  func.func @transform_7(%arg0: i32, %arg1: i32) -> (i32, i32, i32, i32) {
    %c0_i32 = arith.constant 0 : i32
    %c0_i32_0 = arith.constant 0 : i32
    %c0_i32_1 = arith.constant 0 : i32
    return %arg0, %c0_i32, %arg1, %c0_i32_0 : i32, i32, i32, i32
  }
  func.func @transform_8(%arg0: i32, %arg1: i32) -> (i32, i32, i32, i32) {
    %c0_i32 = arith.constant 0 : i32
    %c0_i32_0 = arith.constant 0 : i32
    %c0_i32_1 = arith.constant 0 : i32
    return %arg0, %c0_i32, %arg1, %c0_i32_0 : i32, i32, i32, i32
  }
  func.func @transform_9(%arg0: i32, %arg1: i32) -> (i32, i32, i32, i32) {
    %c0_i32 = arith.constant 0 : i32
    %c0_i32_0 = arith.constant 0 : i32
    %c0_i32_1 = arith.constant 0 : i32
    return %arg0, %c0_i32, %arg1, %c0_i32_0 : i32, i32, i32, i32
  }
}

module attributes {stable_mosaic.version = 11 : i64} {
  func.func @_qkv_proj_kernel(%arg0: i32, %arg1: i32, %arg2: memref<1x8x32xbf16, #tpu.memory_space<vmem>>, %arg3: memref<32x32xbf16, #tpu.memory_space<vmem>>, %arg4: memref<32x32xbf16, #tpu.memory_space<vmem>>, %arg5: memref<32x32xbf16, #tpu.memory_space<vmem>>, %arg6: memref<1x32xf32, #tpu.memory_space<vmem>>, %arg7: memref<1x32xf32, #tpu.memory_space<vmem>>, %arg8: memref<1x32xf32, #tpu.memory_space<vmem>>, %arg9: memref<1x4x8x8xbf16, #tpu.memory_space<vmem>>, %arg10: memref<1x4x8x8xbf16, #tpu.memory_space<vmem>>, %arg11: memref<1x4x8x8xbf16, #tpu.memory_space<vmem>>) attributes {dimension_semantics = [#tpu.dimension_semantics<parallel>, #tpu.dimension_semantics<parallel>], iteration_bounds = array<i64: 2, 1>, scalar_prefetch = 0 : i64, scratch_operands = 0 : i64, tpu.core_type = #tpu.core_type<tc>, window_params = [{transform_indices = @transform_0, window_bounds = array<i64: 1, 8, 32>}, {pipeline_mode = #tpu.pipeline_mode<synchronous>, transform_indices = @transform_1, window_bounds = array<i64: 32, 32>}, {pipeline_mode = #tpu.pipeline_mode<synchronous>, transform_indices = @transform_2, window_bounds = array<i64: 32, 32>}, {pipeline_mode = #tpu.pipeline_mode<synchronous>, transform_indices = @transform_3, window_bounds = array<i64: 32, 32>}, {pipeline_mode = #tpu.pipeline_mode<synchronous>, transform_indices = @transform_4, window_bounds = array<i64: 1, 32>}, {pipeline_mode = #tpu.pipeline_mode<synchronous>, transform_indices = @transform_5, window_bounds = array<i64: 1, 32>}, {pipeline_mode = #tpu.pipeline_mode<synchronous>, transform_indices = @transform_6, window_bounds = array<i64: 1, 32>}, {transform_indices = @transform_7, window_bounds = array<i64: 1, 4, 8, 8>}, {transform_indices = @transform_8, window_bounds = array<i64: 1, 4, 8, 8>}, {transform_indices = @transform_9, window_bounds = array<i64: 1, 4, 8, 8>}]} {
    %c0 = arith.constant 0 : index
    %c0_0 = arith.constant 0 : index
    %c0_1 = arith.constant 0 : index
    %0 = vector.load %arg2[%c0, %c0_0, %c0_1] : memref<1x8x32xbf16, #tpu.memory_space<vmem>>, vector<1x8x32xbf16>
    %1 = vector.shape_cast %0 : vector<1x8x32xbf16> to vector<8x32xbf16>
    %c0_2 = arith.constant 0 : index
    %c0_3 = arith.constant 0 : index
    %2 = vector.load %arg4[%c0_2, %c0_3] : memref<32x32xbf16, #tpu.memory_space<vmem>>, vector<32x32xbf16>
    %cst = arith.constant dense<0.000000e+00> : vector<8x32xf32>
    %3 = tpu.matmul %1, %2, %cst {dimension_numbers = #tpu.dot_dimension_numbers<[1], [0], [0], [1], [0, 0, 1, 1], [], []>} : vector<8x32xbf16>, vector<32x32xbf16>, vector<8x32xf32> -> vector<8x32xf32>
    %c0_4 = arith.constant 0 : index
    %c0_5 = arith.constant 0 : index
    %4 = vector.load %arg7[%c0_4, %c0_5] : memref<1x32xf32, #tpu.memory_space<vmem>>, vector<1x32xf32>
    %5 = vector.shape_cast %4 : vector<1x32xf32> to vector<32xf32>
    %6 = vector.shape_cast %5 : vector<32xf32> to vector<1x32xf32>
    %7 = vector.broadcast %6 : vector<1x32xf32> to vector<8x32xf32>
    %8 = arith.addf %3, %7 : vector<8x32xf32>
    %cst_6 = arith.constant 0.353553385 : f32
    %9 = vector.broadcast %cst_6 : f32 to vector<8x32xf32>
    %10 = arith.mulf %8, %9 : vector<8x32xf32>
    %11 = vector.shape_cast %10 : vector<8x32xf32> to vector<8x4x8xf32>
    %12 = tpu.transpose %11, [1, 0, 2] : vector<8x4x8xf32> -> vector<4x8x8xf32>
    %13 = arith.truncf %12 : vector<4x8x8xf32> to vector<4x8x8xbf16>
    %c0_7 = arith.constant 0 : index
    %c0_8 = arith.constant 0 : index
    %c0_9 = arith.constant 0 : index
    %c0_10 = arith.constant 0 : index
    %14 = vector.load %arg9[%c0_7, %c0_8, %c0_9, %c0_10] : memref<1x4x8x8xbf16, #tpu.memory_space<vmem>>, vector<1x4x8x8xbf16>
    %15 = vector.shape_cast %14 : vector<1x4x8x8xbf16> to vector<4x8x8xbf16>
    %16 = vector.shape_cast %13 : vector<4x8x8xbf16> to vector<1x4x8x8xbf16>
    tpu.vector_store %arg9[%c0_7, %c0_8, %c0_9, %c0_10], %16 {strides = array<i32>} : memref<1x4x8x8xbf16, #tpu.memory_space<vmem>>, vector<1x4x8x8xbf16>,
    %c0_11 = arith.constant 0 : index
    %c0_12 = arith.constant 0 : index
    %17 = vector.load %arg3[%c0_11, %c0_12] : memref<32x32xbf16, #tpu.memory_space<vmem>>, vector<32x32xbf16>
    %cst_13 = arith.constant dense<0.000000e+00> : vector<8x32xf32>
    %18 = tpu.matmul %1, %17, %cst_13 {dimension_numbers = #tpu.dot_dimension_numbers<[1], [0], [0], [1], [0, 0, 1, 1], [], []>} : vector<8x32xbf16>, vector<32x32xbf16>, vector<8x32xf32> -> vector<8x32xf32>
    %c0_14 = arith.constant 0 : index
    %c0_15 = arith.constant 0 : index
    %19 = vector.load %arg6[%c0_14, %c0_15] : memref<1x32xf32, #tpu.memory_space<vmem>>, vector<1x32xf32>
    %20 = vector.shape_cast %19 : vector<1x32xf32> to vector<32xf32>
    %21 = vector.shape_cast %20 : vector<32xf32> to vector<1x32xf32>
    %22 = vector.broadcast %21 : vector<1x32xf32> to vector<8x32xf32>
    %23 = arith.addf %18, %22 : vector<8x32xf32>
    %24 = vector.shape_cast %23 : vector<8x32xf32> to vector<8x4x8xf32>
    %25 = tpu.transpose %24, [1, 0, 2] : vector<8x4x8xf32> -> vector<4x8x8xf32>
    %26 = arith.truncf %25 : vector<4x8x8xf32> to vector<4x8x8xbf16>
    %c0_16 = arith.constant 0 : index
    %c0_17 = arith.constant 0 : index
    %c0_18 = arith.constant 0 : index
    %c0_19 = arith.constant 0 : index
    %27 = vector.load %arg10[%c0_16, %c0_17, %c0_18, %c0_19] : memref<1x4x8x8xbf16, #tpu.memory_space<vmem>>, vector<1x4x8x8xbf16>
    %28 = vector.shape_cast %27 : vector<1x4x8x8xbf16> to vector<4x8x8xbf16>
    %29 = vector.shape_cast %26 : vector<4x8x8xbf16> to vector<1x4x8x8xbf16>
    tpu.vector_store %arg10[%c0_16, %c0_17, %c0_18, %c0_19], %29 {strides = array<i32>} : memref<1x4x8x8xbf16, #tpu.memory_space<vmem>>, vector<1x4x8x8xbf16>,
    %c0_20 = arith.constant 0 : index
    %c0_21 = arith.constant 0 : index
    %30 = vector.load %arg5[%c0_20, %c0_21] : memref<32x32xbf16, #tpu.memory_space<vmem>>, vector<32x32xbf16>
    %cst_22 = arith.constant dense<0.000000e+00> : vector<8x32xf32>
    %31 = tpu.matmul %1, %30, %cst_22 {dimension_numbers = #tpu.dot_dimension_numbers<[1], [0], [0], [1], [0, 0, 1, 1], [], []>} : vector<8x32xbf16>, vector<32x32xbf16>, vector<8x32xf32> -> vector<8x32xf32>
    %c0_23 = arith.constant 0 : index
    %c0_24 = arith.constant 0 : index
    %32 = vector.load %arg8[%c0_23, %c0_24] : memref<1x32xf32, #tpu.memory_space<vmem>>, vector<1x32xf32>
    %33 = vector.shape_cast %32 : vector<1x32xf32> to vector<32xf32>
    %34 = vector.shape_cast %33 : vector<32xf32> to vector<1x32xf32>
    %35 = vector.broadcast %34 : vector<1x32xf32> to vector<8x32xf32>
    %36 = arith.addf %31, %35 : vector<8x32xf32>
    %37 = vector.shape_cast %36 : vector<8x32xf32> to vector<8x4x8xf32>
    %38 = tpu.transpose %37, [1, 0, 2] : vector<8x4x8xf32> -> vector<4x8x8xf32>
    %39 = arith.truncf %38 : vector<4x8x8xf32> to vector<4x8x8xbf16>
    %c0_25 = arith.constant 0 : index
    %c0_26 = arith.constant 0 : index
    %c0_27 = arith.constant 0 : index
    %c0_28 = arith.constant 0 : index
    %40 = vector.load %arg11[%c0_25, %c0_26, %c0_27, %c0_28] : memref<1x4x8x8xbf16, #tpu.memory_space<vmem>>, vector<1x4x8x8xbf16>
    %41 = vector.shape_cast %40 : vector<1x4x8x8xbf16> to vector<4x8x8xbf16>
    %42 = vector.shape_cast %39 : vector<4x8x8xbf16> to vector<1x4x8x8xbf16>
    tpu.vector_store %arg11[%c0_25, %c0_26, %c0_27, %c0_28], %42 {strides = array<i32>} : memref<1x4x8x8xbf16, #tpu.memory_space<vmem>>, vector<1x4x8x8xbf16>,
    return
  }
  func.func @transform_0(%arg0: i32, %arg1: i32) -> (i32, i32, i32) {
    %c0_i32 = arith.constant 0 : i32
    %c0_i32_0 = arith.constant 0 : i32
    return %arg0, %arg1, %c0_i32 : i32, i32, i32
  }
  func.func @transform_1(%arg0: i32, %arg1: i32) -> (i32, i32) {
    %c0_i32 = arith.constant 0 : i32
    %c0_i32_0 = arith.constant 0 : i32
    %c0_i32_1 = arith.constant 0 : i32
    return %c0_i32, %c0_i32_0 : i32, i32
  }
  func.func @transform_2(%arg0: i32, %arg1: i32) -> (i32, i32) {
    %c0_i32 = arith.constant 0 : i32
    %c0_i32_0 = arith.constant 0 : i32
    %c0_i32_1 = arith.constant 0 : i32
    return %c0_i32, %c0_i32_0 : i32, i32
  }
  func.func @transform_3(%arg0: i32, %arg1: i32) -> (i32, i32) {
    %c0_i32 = arith.constant 0 : i32
    %c0_i32_0 = arith.constant 0 : i32
    %c0_i32_1 = arith.constant 0 : i32
    return %c0_i32, %c0_i32_0 : i32, i32
  }
  func.func @transform_4(%arg0: i32, %arg1: i32) -> (i32, i32) {
    %c0_i32 = arith.constant 0 : i32
    %c0_i32_0 = arith.constant 0 : i32
    %c0_i32_1 = arith.constant 0 : i32
    return %c0_i32, %c0_i32_0 : i32, i32
  }
  func.func @transform_5(%arg0: i32, %arg1: i32) -> (i32, i32) {
    %c0_i32 = arith.constant 0 : i32
    %c0_i32_0 = arith.constant 0 : i32
    %c0_i32_1 = arith.constant 0 : i32
    return %c0_i32, %c0_i32_0 : i32, i32
  }
  func.func @transform_6(%arg0: i32, %arg1: i32) -> (i32, i32) {
    %c0_i32 = arith.constant 0 : i32
    %c0_i32_0 = arith.constant 0 : i32
    %c0_i32_1 = arith.constant 0 : i32
    return %c0_i32, %c0_i32_0 : i32, i32
  }
  func.func @transform_7(%arg0: i32, %arg1: i32) -> (i32, i32, i32, i32) {
    %c0_i32 = arith.constant 0 : i32
    %c0_i32_0 = arith.constant 0 : i32
    %c0_i32_1 = arith.constant 0 : i32
    return %arg0, %c0_i32, %arg1, %c0_i32_0 : i32, i32, i32, i32
  }
  func.func @transform_8(%arg0: i32, %arg1: i32) -> (i32, i32, i32, i32) {
    %c0_i32 = arith.constant 0 : i32
    %c0_i32_0 = arith.constant 0 : i32
    %c0_i32_1 = arith.constant 0 : i32
    return %arg0, %c0_i32, %arg1, %c0_i32_0 : i32, i32, i32, i32
  }
  func.func @transform_9(%arg0: i32, %arg1: i32) -> (i32, i32, i32, i32) {
    %c0_i32 = arith.constant 0 : i32
    %c0_i32_0 = arith.constant 0 : i32
    %c0_i32_1 = arith.constant 0 : i32
    return %arg0, %c0_i32, %arg1, %c0_i32_0 : i32, i32, i32, i32
  }
}

</mosaic_0001>

<bundles_post_ra>
// kernel: tpu_custom_call.1
= control target key start
LH: loop header
LB: loop body
LE: loop exit
PB: predicated region body
PF: predicated region fallthrough
CT: control target
= control target key end

     0   :  { %s2126_s0 = inlined_call_operand.hbm [shape: bf16[2,8,32], index: 0, kind: input, shape index: {}]   ;;  %s2127_s1 = inlined_call_operand.hbm [shape: bf16[32,32], index: 1, kind: input, shape index: {}]   ;;  %s2128_s2 = inlined_call_operand.hbm [shape: bf16[32,32], index: 2, kind: input, shape index: {}]   ;;  %s2129_s3 = inlined_call_operand.hbm [shape: bf16[32,32], index: 3, kind: input, shape index: {}]   ;;  %s2130_s4 = inlined_call_operand.vmem [shape: f32[1,32], index: 4, kind: input, shape index: {}]   ;;  %s2131_s5 = inlined_call_operand.vmem [shape: f32[1,32], index: 5, kind: input, shape index: {}]   ;;  %s2132_s6 = inlined_call_operand.vmem [shape: f32[1,32], index: 6, kind: input, shape index: {}]   ;;  %s2133_s7 = inlined_call_operand.hbm [shape: bf16[2,4,8,8], index: 7, kind: output, shape index: {0}]   ;;  %s2134_s8 = inlined_call_operand.hbm [shape: bf16[2,4,8,8], index: 8, kind: output, shape index: {1}]   ;;  %s2135_s9 = inlined_call_operand.hbm [shape: bf16[2,4,8,8], index: 9, kind: output, shape index: {2}]  }
   0x1   :  { %2138 = sst [smem:[#allocation20_spill]] %s2126_s0 }
   0x2   :  { %2139 = sst [smem:[#allocation21_spill]] %s2127_s1 }
   0x3   :  { %2140 = sst [smem:[#allocation22_spill]] %s2128_s2 }
   0x4   :  { %2141 = sst [smem:[#allocation23_spill]] %s2129_s3 }
   0x5   :  { %2142 = sst [smem:[#allocation24_spill]] %s2130_s4 }
   0x6   :  { %15 = vsyncpa [#allocation3], 0 }
   0x7   :  { %17 = vsyncpa [#allocation3 + $0x1], 0 }
   0x8   :  { %18 = vsyncpa [#allocation6], 0 }
   0x9   :  { %19 = vsyncpa [#allocation9], 0 }
   0xa   :  { %20 = vsyncpa [#allocation4], 0 }
   0xb   :  { %22 = vsyncpa [#allocation4 + $0x1], 0 }
   0xc   :  { %23 = vsyncpa [#allocation12], 0 }
   0xd   :  { %25 = vsyncpa [#allocation12 + $0x1], 0  ;;  %s1702_s30 = smov 0   ;;  %s1704_s10 = smov 0  }
   0xe   :  { %s1706_s11 = smov 0   ;;  %s1708_s12 = smov 0  }
   0xf   :  { %s1710_s13 = smov 0   ;;  %s1712_s14 = smov 0  }
  0x10 LB: > { %s1733_s15 = sadd.s32 4294967295, %s1638_s14   ;;  %p1176_p0 = scmp.ge.s32.totalorder %s1638_s14, 1  ;;  %s1638_s14 = sphi %s1712_s14, %s31_s14   ;;  %s1634_s13 = sphi %s1710_s13, %s2161_s13   ;;  %s1630_s12 = sphi %s1708_s12, %s2160_s12   ;;  %s1626_s11 = sphi %s1706_s11, %s2159_s11   ;;  %s1622_s10 = sphi %s1704_s10, %s2158_s10   ;;  %s1618_s30 = sphi %s1702_s30, %s2157_s30  }
  0x11   : > { %p66_p1 = scmp.eq.s32.totalorder %s1733_s15, 0  ;;  %p286_p2 = scmp.lt.s32.totalorder %s1638_s14, 3 }
  0x12   : > { %s2143_s1 = sld [smem:[#allocation21_spill]]  ;;  %s1640_s20 = smov [#allocation5]  }
  0x13   : > { %p1741_p3 = pnand %p1176_p0, %p286_p2  ;;  %s299_s21 = sshll.u32 %s1640_s20, 4  ;;  %s300_s21 = int_to_ptr.vmem [resolvable:$true] %s299_s21 }
  0x14   : > { %p1180_p6 = scmp.ge.s32.totalorder %s1638_s14, 2  ;;  %s2146_s2 = sld [smem:[#allocation22_spill]] }
  0x15   : > { %p1258_p4 = pneg %p1741_p3  ;;  %s1641_s26 = smov 64  }
  0x16   : > { %s1642_s27 = smov 4   ;;  %s1643_s28 = smov [#allocation7]  }
  0x17   : > { %p1749_p5 = pnand %p1258_p4, %p66_p1  ;;  %s313_s29 = sshll.u32 %s1643_s28, 4  ;;  %s314_s29 = int_to_ptr.vmem [resolvable:$true] %s313_s29 }
  0x18   : > { %s297_s18 = sshll.u32 %s2143_s1, 4  ;;  %s2147_s3 = sld [smem:[#allocation23_spill]]  ;;  %s298_s18 = int_to_ptr.hbm [resolvable:$true] %s297_s18 }
  0x19   : > { %1261 = dma.hbm_to_vmem [thread:$0]  (!%p1749_p5), %s298_s18, 256, %s300_s21, [#allocation6], %s1641_s26, %s1641_s26, %s1642_s27  }
  0x1a   : > { %s311_s25 = sshll.u32 %s2146_s2, 4  ;;  %s1644_s23 = smov [#allocation8]   ;;  %s312_s25 = int_to_ptr.hbm [resolvable:$true] %s311_s25 }
  0x1b   : > { %1264 = dma.hbm_to_vmem [thread:$0]  (!%p1749_p5), %s312_s25, 256, %s314_s29, [#allocation6], %s1641_s26, %s1641_s26, %s1642_s27  }
  0x1c   : > { %s327_s24 = sshll.u32 %s1644_s23, 4  ;;  %s2136_s18 = sadd.s32 4294967294, %s1638_s14   ;;  %s328_s24 = int_to_ptr.vmem [resolvable:$true] %s327_s24 }
  0x1d   : > { %s43_s21 = sadd.s32 1, %s1634_s13  ;;  %s52_s28 = sadd.s32 1, %s1626_s11 }
  0x1e   : > { %s325_s20 = sshll.u32 %s2147_s3, 4  ;;  %p45_p7 = scmp.ge.s32.totalorder %s43_s21, 2  ;;  %s326_s20 = int_to_ptr.hbm [resolvable:$true] %s325_s20 }
  0x1f   : > { %1267 = dma.hbm_to_vmem [thread:$0]  (!%p1749_p5), %s326_s20, 256, %s328_s24, [#allocation9], %s1641_s26, %s1641_s26, %s1642_s27  }
  0x20   : > { %p59_p8 = scmp.ne.s32.totalorder %s1626_s11, %s1622_s10  ;;  %p60_p9 = scmp.eq.s32.totalorder %s1638_s14, 0 }
  0x21   : > { %p65_p10 = scmp.ne.s32.totalorder %s1622_s10, %s1618_s30  ;;  %s2163_s21 = smov (%p45_p7, %s43_s21), 0 }
  0x22   : > { %2148 = sst [smem:[#allocation19_spill]] %s2163_s21  ;;  %p1776_p11 = por %p60_p9, %p59_p8 }
  0x23   : > { %p1782_p12 = por %p66_p1, %p65_p10  ;;  %s47_s26 = ssub.s32 %s1634_s13, %s2163_s21 }
  0x24   : > { %p217_p13 = scmp.eq.s32.totalorder %s1733_s15, 1  ;;  %p50_p0 = scmp.eq.s32.totalorder %s47_s26, 0 }
  0x25   : > { %p223_p2 = scmp.eq.s32.totalorder %s2136_s18, 1  ;;  %p1285_p5 = scmp.lt.s32.totalorder %s1638_s14, 2 }
  0x26   : > { %p1791_p4 = por %p217_p13, %p59_p8  ;;  %s350_s17 = sand.u32 1, %s1626_s11  }
  0x27   : > { %s1797_s29 = scalar_select %p50_p0, %s1626_s11, %s52_s28  }
  0x28   : > { %p1799_p7 = por %p223_p2, %p65_p10  ;;  %s1181_s20 = sshll.u32 %s350_s17, 2 }
  0x29   : > { %s1182_s23 = sshll.u32 %s1634_s13, 2  ;;  %s2153_s0 = sld [smem:[#allocation20_spill]] }
  0x2a   : > { %s354_s2 = scalar_lea.vmem [#allocation2], %s1181_s20  ;;  %p1269_p8 = pnand %p1285_p5, %p1776_p11 }
  0x2b   : > { %s363_s18 = sshll.u32 %s354_s2, 4  ;;  %s351_s28 = scalar_lea.sflag [#allocation3], %s350_s17  ;;  %s364_s18 = int_to_ptr.vmem [resolvable:$true] %s363_s18 }
  0x2c   : > { %s1813_s21 = sand.u32 (!%p1741_p3), 1, %s1622_s10  }
  0x2d   : > { %372 = sbr.rel (%p1741_p3) target bundleno = 394 (0x18a), region = 48  ;;  %s1184_s1 = sshll.u32 (!%p1741_p3), %s1813_s21, 2 }
  0x2e   : > { %s378_s20 = scalar_lea.vmem (!%p1741_p3), [#allocation2], %s1184_s1 }
  0x2f   : > { %s359_s26 = scalar_lea.hbm %s2153_s0, %s1182_s23  ;;  %s375_s23 = scalar_lea.sflag (!%p1741_p3), [#allocation3], %s1813_s21 }
  0x30   : > { %s361_s3 = sshll.u32 %s359_s26, 4  ;;  %s362_s3 = int_to_ptr.hbm [resolvable:$true] %s361_s3 }
  0x31   : > { %1271 = dma.hbm_to_vmem [thread:$0]  (!%p1269_p8), %s362_s3, 64, %s364_s18, %s351_s28  }
  0x32   : > { %1597 = dma.done.wait (%p1782_p12), %s375_s23, 64  }
  0x33   : > { %1599 = vsyncadd (%p1782_p12), %s375_s23, 4294967232 }
  0x34   : > { %1601 = dma.done.wait (%p66_p1), [#allocation6], 512  }
  0x35   : > { %1603 = vsyncadd (%p66_p1), [#allocation6], 4294966784 }
  0x36   : > { %1605 = dma.done.wait (%p66_p1), [#allocation9], 256  }
  0x37   : > { %1607 = vsyncadd (%p66_p1), [#allocation9], 4294967040  ;;  %v1230_v0 = vld [vmem:[#allocation7 + $0x8] sm:$0xff]  ;;  %v1232_v1 = vld [vmem:[#allocation5 + $0x8] sm:$0xff]  ;;  %vm461_vm0 = vcmask 261120   ;;  %s2154_s4 = sld [smem:[#allocation24_spill]] }
  0x38   : > { %v1234_v2 = vld [vmem:[#allocation8 + $0x8] sm:$0xff]  ;;  %471 = vmatpush.bf16.msra.mxu0 %v1230_v0  ;;  %635 = vmatpush.bf16.msra.mxu1 %v1232_v1  ;;  %v1229_v3 = vld [vmem:[#allocation7] sm:$0xff]  ;;  %v1231_v4 = vld [vmem:[#allocation5] sm:$0xff]  ;;  %s1645_s17 = smov 120   ;;  %s1646_s24 = smov 112   ;;  %vm490_vm1 = vcmask 1047556  }
  0x39   : > { %796 = vmatpush.bf16.msra.mxu2 %v1234_v2  ;;  %v1233_v5 = vld [vmem:[#allocation8] sm:$0xff]  ;;  %v440_v6 = vld [vmem:[%s378_s20] sm:$0xf]  ;;  %s1647_s26 = smov 104   ;;  %v1648_v24 = vmov 1983009808  }
  0x3a   : > { %v1365_v7 = vld [vmem:[%s2131_s5] ss:$0 sm:$0xff]  ;;  %v495_v25 = vunpack.c.l.s4 %v1648_v24  ;;  %v1649_v39 = vmov 1934713408   ;;  %s1952_s28 = sshll.u32 %s1630_s12, 4  ;;  %s1962_s1 = sshll.u32 %s1813_s21, 4 }
  0x3b   : > { %v1367_v14 = vld [vmem:[%s2132_s6] ss:$0 sm:$0xff]  ;;  %v519_v40 = vunpack.c.l.s4 %v1649_v39  ;;  %s972_s20 = scalar_lea.hbm %s2134_s8, %s1952_s28  ;;  %s936_s2 = sand.u32 1, %s1733_s15   ;;  %vm604_vm2 = vcmask 60416  }
  0x3c   : > { %472 = vmatpush.bf16.msra.mxu0 %v1229_v3  ;;  %636 = vmatpush.bf16.msra.mxu1 %v1231_v4  ;;  %v1845_v36 = vunpack.c.0.s8 %v495_v25  ;;  %s431_s3 = scalar_lea.vmem [#allocation11], %s1962_s1  ;;  %s1980_s18 = sshll.u32 %s972_s20, 4  ;;  %s976_s18 = int_to_ptr.hbm [resolvable:$true] %s1980_s18 }
  0x3d   : > { %797 = vmatpush.bf16.msra.mxu2 %v1233_v5  ;;  %v1366_v8 = vld [vmem:[%s2154_s4] ss:$0 sm:$0xff]  ;;  %v1858_v52 = vunpack.c.0.s8 %v519_v40  ;;  %s973_s19 = sshll.u32 %s431_s3, 4  ;;  %s2021_s23 = scalar_lea.sflag [#allocation12], %s936_s2  ;;  %s1997_s19 = int_to_ptr.vmem [resolvable:$true] %s973_s19 }
  0x3e   : > { %s1502_s20 = sshra.s32 %s976_s18, 4  ;;  %s1503_s20 = int_to_ptr.hbm [resolvable:$true] %s1502_s20 }
  0x3f   : > { %1199 = vmatmul.msk.bf16.vlgmr.msra.gmra.mxu0 %vm461_vm0, %v440_v6  ;;  %1208 = vmatmul.msk.bf16.vlgmr.msra.gmra.mxu1 %vm461_vm0, %v440_v6  ;;  %p1509_p10 = scmp.lt.s32.totalorder %s1503_s20, %s2134_s8 }
  0x40   : > { %1217 = vmatmul.msk.bf16.vlgmr.msra.gmra.mxu2 %vm461_vm0, %v440_v6 }
  0xbc   : > { %v474_v9 = vpop.f32.mrf.mxu0  ;;  %v638_v10 = vpop.f32.mrf.mxu1 }
  0xbd   : > { %v475_v11 = vadd.f32 %v1365_v7, %v474_v9  ;;  %v639_v12 = vadd.f32 %v1366_v8, %v638_v10 }
  0xbf   : > { %v478_v13 = vmul.f32 0.35355338, %v475_v11  ;;  %v654_v31 = vrot.slane %v639_v12, 4 }
  0xc1   : > { %v1355_v15 = vpack.i.bf16 %v478_v13, %v639_v12  ;;  %v492_v30 = vrot.slane %v478_v13, 4 }
  0xc3   : > { %v799_v16 = vpop.f32.mrf.mxu2  ;;  %1356 = vrot.lane.b32.xlu1 %v1355_v15, %s1645_s17  ;;  %1351 = vrot.lane.b32.xlu0 %v1355_v15, %s1646_s24 }
  0xc4   : > { %v1838_v17 = vadd.f32 %v1367_v14, %v799_v16  ;;  %v476_v18 = vpop.f32.mrf.mxu0  ;;  %v640_v19 = vpop.f32.mrf.mxu1 }
  0xc6   : > { %804 = vrot.lane.b32.xlu2 %v1838_v17, %s1645_s17  ;;  %v815_v48 = vrot.slane %v1838_v17, 4  ;;  %s954_s17 = scalar_lea.hbm %s2133_s7, %s1952_s28 }
  0xc7   : > { %s2013_s12 = sshll.u32 %s954_s17, 4  ;;  %s1508_s17 = scalar_lea.hbm %s2134_s8, 32  ;;  %s958_s12 = int_to_ptr.hbm [resolvable:$true] %s2013_s12 }
  0xcb   : > { %v801_v20 = vpop.f32.mrf.mxu2  ;;  %1361 = vrot.lane.b32.xlu1 %v1355_v15, %s1647_s26  ;;  %807 = vrot.lane.b32.xlu0 %v1838_v17, %s1646_s24  ;;  %s2010_s24 = scalar_lea.vmem [#allocation10], %s1962_s1 }
  0xce   : > { %810 = vrot.lane.b32.xlu2 %v1838_v17, %s1647_s26  ;;  %s955_s26 = sshll.u32 %s2010_s24, 4  ;;  %s956_s26 = int_to_ptr.vmem [resolvable:$true] %s955_s26 }
 0x120   : > { %v805_v21 = vpop.permute.xlu2 %804 }
 0x121   : > { %v827_v32 = vrot.slane %v805_v21, 4 }
 0x128   : > { %v811_v22 = vpop.permute.xlu2 %810 }
 0x129   : > { %v825_v23 = vrot.slane %v811_v22, 4  ;;  %v828_v47 = vsel %vm490_vm1, %v811_v22, %v827_v32 }
 0x12a   : > { %v1862_v59 = vperm.slane %v828_v47, %v1845_v36 }
 0x12b   : > { %v826_v33 = vsel %vm490_vm1, %v825_v23, %v805_v21 }
 0x12c   : > { %v1850_v44 = vperm.slane %v826_v33, %v1845_v36 }
 0x12e   : > { %v837_v60 = vrot.slane %v1850_v44, 4 }
 0x135   : > { %v1357_v26 = vpop.permute.xlu1 %1356  ;;  %v1352_v27 = vpop.permute.xlu0 %1351 }
 0x136   : > { %v1354_v28 = vunpack.i.h.bf16 %v1352_v27  ;;  %v1353_v29 = vunpack.i.l.bf16 %v1352_v27  ;;  %v1359_v37 = vunpack.i.h.bf16 %v1357_v26  ;;  %v1358_v41 = vunpack.i.l.bf16 %v1357_v26 }
 0x138   : > { %v489_v34 = vrot.slane %v1354_v28, 4  ;;  %v493_v35 = vsel %vm490_vm1, %v1354_v28, %v492_v30  ;;  %v652_v38 = vrot.slane %v1353_v29, 4  ;;  %v655_v43 = vsel %vm490_vm1, %v1353_v29, %v654_v31 }
 0x139   : > { %v501_v45 = vperm.slane %v493_v35, %v1845_v36  ;;  %v504_v49 = vrot.slane %v1359_v37, 4  ;;  %v663_v51 = vperm.slane %v655_v43, %v1845_v36  ;;  %v666_v55 = vrot.slane %v1358_v41, 4 }
 0x13a   : > { %v491_v42 = vsel %vm490_vm1, %v489_v34, %v478_v13  ;;  %v653_v46 = vsel %vm490_vm1, %v652_v38, %v639_v12 }
 0x13b   : > { %v497_v50 = vperm.slane %v491_v42, %v1845_v36  ;;  %v659_v56 = vperm.slane %v653_v46, %v1845_v36  ;;  %v528_v61 = vrot.slane %v501_v45, 4  ;;  %v690_v4 = vrot.slane %v663_v51, 4 }
 0x13d   : > { %v1362_v53 = vpop.permute.xlu1 %1361  ;;  %v808_v54 = vpop.permute.xlu0 %807  ;;  %v516_v3 = vrot.slane %v497_v50, 4  ;;  %v678_v7 = vrot.slane %v659_v56, 4 }
 0x13e   : > { %v1364_v57 = vunpack.i.h.bf16 %v1362_v53  ;;  %v1363_v58 = vunpack.i.l.bf16 %v1362_v53  ;;  %v813_v62 = vrot.slane %v808_v54, 4  ;;  %v1872_v10 = vsel %vm490_vm1, %v808_v54, %v815_v48 }
 0x140   : > { %v502_v63 = vrot.slane %v1364_v57, 4  ;;  %v505_v0 = vsel %vm490_vm1, %v1364_v57, %v504_v49  ;;  %v664_v1 = vrot.slane %v1363_v58, 4  ;;  %v667_v2 = vsel %vm490_vm1, %v1363_v58, %v666_v55 }
 0x141   : > { %v513_v5 = vperm.slane %v505_v0, %v1845_v36  ;;  %v675_v6 = vperm.slane %v667_v2, %v1845_v36  ;;  %v814_v19 = vsel %vm490_vm1, %v813_v62, %v1838_v17 }
 0x142   : > { %v503_v8 = vsel %vm490_vm1, %v502_v63, %v1359_v37  ;;  %v665_v9 = vsel %vm490_vm1, %v664_v1, %v1358_v41  ;;  %v820_v63 = vperm.slane %v814_v19, %v1845_v36 }
 0x143   : > { %v509_v11 = vperm.slane %v503_v8, %v1845_v36  ;;  %v526_v12 = vrot.slane %v513_v5, 4  ;;  %v529_v13 = vsel %vm490_vm1, %v513_v5, %v528_v61  ;;  %v671_v14 = vperm.slane %v665_v9, %v1845_v36 }
 0x144   : > { %v537_v15 = vperm.slane %v529_v13, %v1858_v52  ;;  %v688_v16 = vrot.slane %v675_v6, 4  ;;  %v691_v18 = vsel %vm490_vm1, %v675_v6, %v690_v4 }
 0x145   : > { %v514_v20 = vrot.slane %v509_v11, 4  ;;  %v517_v21 = vsel %vm490_vm1, %v509_v11, %v516_v3  ;;  %v527_v22 = vsel %vm490_vm1, %v526_v12, %v501_v45  ;;  %v676_v23 = vrot.slane %v671_v14, 4 }
 0x146   : > { %v525_v24 = vperm.slane %v517_v21, %v1858_v52  ;;  %v533_v25 = vperm.slane %v527_v22, %v1858_v52  ;;  %v544_v26 = vrot.slane %v537_v15, 4  ;;  %v679_v27 = vsel %vm490_vm1, %v671_v14, %v678_v7 }
 0x147   : > { %v515_v28 = vsel %vm490_vm1, %v514_v20, %v497_v50  ;;  %v677_v29 = vsel %vm490_vm1, %v676_v23, %v659_v56  ;;  %v687_v30 = vperm.slane %v679_v27, %v1858_v52  ;;  %v689_v17 = vsel %vm490_vm1, %v688_v16, %v663_v51 }
 0x148   : > { %v521_v31 = vperm.slane %v515_v28, %v1858_v52  ;;  %v540_v32 = vrot.slane %v525_v24, 4  ;;  %v542_v33 = vrot.slane %v533_v25, 4  ;;  %v545_v34 = vsel %vm490_vm1, 0.0, %v544_v26 }
 0x149   : > { %v557_v35 = vsel %vm490_vm1, %v544_v26, %v533_v25  ;;  %v562_v37 = vrot.slane %v545_v34, 4  ;;  %v683_v38 = vperm.slane %v677_v29, %v1858_v52  ;;  %v695_v39 = vperm.slane %v689_v17, %v1858_v52 }
 0x14a   : > { %v538_v40 = vrot.slane %v521_v31, 4  ;;  %v541_v41 = vsel %vm490_vm1, 0.0, %v540_v32  ;;  %v543_v42 = vsel %vm490_vm1, 0.0, %v542_v33  ;;  %v546_v43 = vsel %vm490_vm1, %v540_v32, %v521_v31 }
 0x14b   : > { %v550_v45 = vperm.slane %v546_v43, %v1845_v36  ;;  %v551_v46 = vrot.slane %v541_v41, 4  ;;  %v561_v47 = vperm.slane %v557_v35, %v1845_v36  ;;  %v563_v48 = vsel %vm490_vm1, %v562_v37, %v543_v42 }
 0x14c   : > { %v539_v49 = vsel %vm490_vm1, 0.0, %v538_v40  ;;  %v567_v50 = vperm.slane %v563_v48, %v1845_v36  ;;  %v699_v51 = vperm.slane %v691_v18, %v1858_v52  ;;  %v700_v53 = vrot.slane %v683_v38, 4 }
 0x14d   : > { %v552_v54 = vsel %vm490_vm1, %v551_v46, %v539_v49  ;;  %v570_v55 = vrot.slane %v550_v45, 4  ;;  %v582_v56 = vrot.slane %v561_v47, 4  ;;  %v702_v57 = vrot.slane %v687_v30, 4 }
 0x14e   : > { %v556_v58 = vperm.slane %v552_v54, %v1845_v36  ;;  %v580_v61 = vrot.slane %v567_v50, 4  ;;  %v704_v62 = vrot.slane %v695_v39, 4  ;;  %v706_v2 = vrot.slane %v699_v51, 4 }
 0x14f   : > { %v583_v0 = vsel %vm490_vm1, %v567_v50, %v582_v56  ;;  %v703_v1 = vsel %vm490_vm1, 0.0, %v702_v57  ;;  %v708_v3 = vsel %vm490_vm1, %v702_v57, %v683_v38  ;;  %v701_v11 = vsel %vm490_vm1, 0.0, %v700_v53 }
 0x150   : > { %v568_v4 = vrot.slane %v556_v58, 4  ;;  %v571_v5 = vsel %vm490_vm1, %v556_v58, %v570_v55  ;;  %v581_v6 = vsel %vm490_vm1, %v580_v61, %v561_v47  ;;  %v591_v7 = vperm.slane %v583_v0, %v1858_v52 }
 0x151   : > { %v579_v8 = vperm.slane %v571_v5, %v1858_v52  ;;  %v587_v9 = vperm.slane %v581_v6, %v1858_v52  ;;  %v707_v12 = vsel %vm490_vm1, 0.0, %v706_v2  ;;  %v705_v15 = vsel %vm490_vm1, 0.0, %v704_v62 }
 0x152   : > { %v569_v13 = vsel %vm490_vm1, %v568_v4, %v550_v45  ;;  %v596_v14 = vrot.slane %v591_v7, 4  ;;  %v713_v16 = vrot.slane %v703_v1, 4  ;;  %v712_v20 = vperm.slane %v708_v3, %v1845_v36 }
 0x153   : > { %v575_v18 = vperm.slane %v569_v13, %v1858_v52  ;;  %v592_v19 = vrot.slane %v587_v9, 4  ;;  %v719_v21 = vsel %vm490_vm1, %v706_v2, %v695_v39  ;;  %v724_v24 = vrot.slane %v707_v12, 4 }
 0x154   : > { %v714_v22 = vsel %vm490_vm1, %v713_v16, %v701_v11  ;;  %v723_v23 = vperm.slane %v719_v21, %v1845_v36  ;;  %v849_v25 = vrot.slane %v1862_v59, 4  ;;  %v824_v26 = vperm.slane %v1872_v10, %v1845_v36 }
 0x155   : > { %v838_v27 = vsel %vm490_vm1, %v837_v60, %v820_v63  ;;  %v1931_v28 = vsel %vm490_vm1, %v596_v14, %v579_v8  ;;  %v598_v29 = vrot.slane %v579_v8, 4  ;;  %v718_v30 = vperm.slane %v714_v22, %v1845_v36 }
 0x156   : > { %v725_v17 = vsel %vm490_vm1, %v724_v24, %v705_v15  ;;  %v1936_v31 = vsel %vm490_vm1, %v592_v19, %v575_v18  ;;  %v732_v33 = vrot.slane %v712_v20, 4  ;;  %v744_v34 = vrot.slane %v723_v23, 4 }
 0x157   : > { %v729_v32 = vperm.slane %v725_v17, %v1845_v36  ;;  %v594_v10 = vrot.slane %v575_v18, 4  ;;  %v730_v35 = vrot.slane %v718_v30, 4  ;;  %v839_v37 = vrot.slane %v820_v63, 4 }
 0x158   : > { %v844_v60 = vperm.slane %v838_v27, %v1858_v52  ;;  %v733_v38 = vsel %vm490_vm1, %v718_v30, %v732_v33  ;;  %v850_v41 = vsel %vm490_vm1, %v849_v25, %v824_v26  ;;  %v851_v50 = vrot.slane %v824_v26, 4 }
 0x159   : > { %v742_v39 = vrot.slane %v729_v32, 4  ;;  %v745_v40 = vsel %vm490_vm1, %v729_v32, %v744_v34  ;;  %v731_v42 = vsel %vm490_vm1, %v730_v35, %v712_v20  ;;  %v741_v43 = vperm.slane %v733_v38, %v1858_v52 }
 0x15a   : > { %v753_v45 = vperm.slane %v745_v40, %v1858_v52  ;;  %v840_v46 = vsel %vm490_vm1, %v1850_v44, %v839_v37  ;;  %v737_v47 = vperm.slane %v731_v42, %v1858_v52  ;;  %v856_v55 = vperm.slane %v850_v41, %v1858_v52 }
 0x15b   : > { %v743_v48 = vsel %vm490_vm1, %v742_v39, %v723_v23  ;;  %v848_v49 = vperm.slane %v840_v46, %v1858_v52  ;;  %v760_v54 = vrot.slane %v741_v43, 4  ;;  %v1957_v56 = vsel %vm490_vm1, %v591_v7, %v598_v29 }
 0x15c   : > { %v749_v51 = vperm.slane %v743_v48, %v1858_v52  ;;  %v758_v53 = vrot.slane %v753_v45, 4  ;;  %v756_v44 = vrot.slane %v737_v47, 4  ;;  %v852_v57 = vsel %vm490_vm1, %v1862_v59, %v851_v50 }
 0x15d   : > { %v863_v58 = vrot.slane %v848_v49, 4  ;;  %v860_v63 = vperm.slane %v852_v57, %v1858_v52  ;;  %v861_v0 = vrot.slane %v844_v60, 4  ;;  %v1971_v1 = vsel %vm490_vm1, %v587_v9, %v594_v10 }
 0x15e   : > { %v754_v61 = vrot.slane %v749_v51, 4  ;;  %v759_v62 = vsel %vm490_vm1, %v758_v53, %v741_v43  ;;  %v757_v2 = vsel %vm490_vm1, %v749_v51, %v756_v44  ;;  %v761_v59 = vsel %vm490_vm1, %v753_v45, %v760_v54 }
 0x15f   : > { %v764_v3 = vpack.c.bf16 %v759_v62, %v759_v62  ;;  %v763_v5 = vpack.c.bf16 %v757_v2, %v757_v2  ;;  %v864_v6 = vsel %vm490_vm1, 0.0, %v863_v58  ;;  %v865_v7 = vrot.slane %v856_v55, 4 }
 0x160   : > { %v755_v4 = vsel %vm490_vm1, %v754_v61, %v737_v47  ;;  %v867_v11 = vrot.slane %v860_v63, 4  ;;  %v869_v12 = vsel %vm490_vm1, %v863_v58, %v844_v60  ;;  %v874_v13 = vrot.slane %v864_v6, 4 }
 0x161   : > { %v762_v8 = vpack.c.bf16 %v755_v4, %v755_v4  ;;  %v765_v9 = vpack.c.bf16 %v761_v59, %v761_v59  ;;  %v862_v14 = vsel %vm490_vm1, 0.0, %v861_v0  ;;  %v873_v15 = vperm.slane %v869_v12, %v1845_v36  ;;  %767 = vst.msk [vmem:[%s431_s3 + $0x4] sm:$0xf] %vm604_vm2, %v763_v5 }
 0x162   : > { %v600_v16 = vpack.c.bf16 %v1936_v31, %v1936_v31  ;;  %v868_v18 = vsel %vm490_vm1, 0.0, %v867_v11  ;;  %v875_v19 = vsel %vm490_vm1, %v874_v13, %v862_v14  ;;  %v880_v20 = vsel %vm490_vm1, %v867_v11, %v856_v55  ;;  %768 = vst.msk [vmem:[%s431_s3 + $0x8] sm:$0xf] %vm604_vm2, %v764_v3 }
 0x163   : > { %766 = vst.msk [vmem:[%s431_s3] sm:$0xf] %vm604_vm2, %v762_v8  ;;  %v879_v21 = vperm.slane %v875_v19, %v1845_v36  ;;  %v884_v22 = vperm.slane %v880_v20, %v1845_v36  ;;  %v885_v23 = vrot.slane %v868_v18, 4  ;;  %v893_v24 = vrot.slane %v873_v15, 4 }
 0x164   : > { %v601_v25 = vpack.c.bf16 %v1971_v1, %v1971_v1  ;;  %v602_v26 = vpack.c.bf16 %v1931_v28, %v1931_v28  ;;  %v866_v27 = vsel %vm490_vm1, 0.0, %v865_v7  ;;  %769 = vst.msk [vmem:[%s431_s3 + $0xc] sm:$0xf] %vm604_vm2, %v765_v9  ;;  %v603_v28 = vpack.c.bf16 %v1957_v56, %v1957_v56  ;;  %s1504_s3 = scalar_lea.hbm %s1503_s20, 16 }
 0x165   : > { %v886_v29 = vsel %vm490_vm1, %v885_v23, %v866_v27  ;;  %v891_v30 = vrot.slane %v879_v21, 4  ;;  %v894_v17 = vsel %vm490_vm1, %v879_v21, %v893_v24  ;;  %v905_v31 = vrot.slane %v884_v22, 4  ;;  %p1505_p1 = scmp.ne.s32.totalorder %s1503_s20, %s1504_s3  ;;  %p1510_p11 = scmp.lt.s32.totalorder %s1508_s17, %s1504_s3 }
 0x166   : > { %v890_v32 = vperm.slane %v886_v29, %v1845_v36  ;;  %v902_v33 = vperm.slane %v894_v17, %v1858_v52 }
 0x167   : > { %p1506_p3 = pnand %p1505_p1, %p1791_p4  ;;  %p1511_p12 = por %p1510_p11, %p1509_p10 }
 0x169   : > { %p1507_p9 = pneg %p1506_p3 }
 0x16b   : > { %p1512_p13 = pnand %p1511_p12, %p1507_p9 }
 0x16d   : > { %1515 = shalt.err (!%p1512_p13)
}
 0x16e   : > { %s1650_s15 = smov 64   ;;  %s1651_s2 = smov 4   ;;  %v892_v36 = vsel %vm490_vm1, %v891_v30, %v873_v15  ;;  %605 = vst.msk [vmem:[%s2010_s24] sm:$0xf] %vm604_vm2, %v600_v16  ;;  %v903_v10 = vrot.slane %v890_v32, 4  ;;  %v906_v35 = vsel %vm490_vm1, %v890_v32, %v905_v31  ;;  %v921_v37 = vrot.slane %v902_v33, 4 }
 0x16f   : > { %1253 = dma.vmem_to_hbm [thread:$0]  (%p1791_p4), %s1997_s19, 256, %s976_s18, %s2021_s23, %s1650_s15, %s1650_s15, %s1651_s2   ;;  %v898_v34 = vperm.slane %v892_v36, %v1858_v52  ;;  %v914_v60 = vperm.slane %v906_v35, %v1858_v52 }
 0x170   : > { %606 = vst.msk [vmem:[%s2010_s24 + $0x4] sm:$0xf] %vm604_vm2, %v601_v25  ;;  %v904_v38 = vsel %vm490_vm1, %v903_v10, %v884_v22  ;;  %s990_s19 = scalar_lea.hbm %s2135_s9, %s1952_s28  ;;  %s932_s18 = scalar_lea.sflag [#allocation4], %s1813_s21 }
 0x171   : > { %607 = vst.msk [vmem:[%s2010_s24 + $0x8] sm:$0xf] %vm604_vm2, %v602_v26  ;;  %v917_v39 = vrot.slane %v898_v34, 4  ;;  %v910_v40 = vperm.slane %v904_v38, %v1858_v52  ;;  %v919_v41 = vrot.slane %v914_v60, 4  ;;  %v922_v42 = vsel %vm490_vm1, %v914_v60, %v921_v37  ;;  %s1530_s20 = sshra.s32 %s958_s12, 4  ;;  %s1536_s17 = scalar_lea.hbm %s2133_s7, 32  ;;  %s1531_s20 = int_to_ptr.hbm [resolvable:$true] %s1530_s20 }
 0x172   : > { %608 = vst.msk [vmem:[%s2010_s24 + $0xc] sm:$0xf] %vm604_vm2, %v603_v28  ;;  %s1532_s3 = scalar_lea.hbm %s1531_s20, 16  ;;  %p1537_p8 = scmp.lt.s32.totalorder %s1531_s20, %s2133_s7 }
 0x173   : > { %p1533_p0 = scmp.ne.s32.totalorder %s1531_s20, %s1532_s3  ;;  %p1538_p1 = scmp.lt.s32.totalorder %s1536_s17, %s1532_s3 }
 0x175   : > { %p1534_p2 = pnand %p1533_p0, %p1791_p4  ;;  %p1539_p3 = por %p1538_p1, %p1537_p8 }
 0x177   : > { %p1535_p5 = pneg %p1534_p2 }
 0x179   : > { %p1540_p9 = pnand %p1539_p3, %p1535_p5 }
 0x17b   : > { %1543 = shalt.err (!%p1540_p9)
}
 0x17c   : > { %1252 = dma.vmem_to_hbm [thread:$0]  (%p1791_p4), %s956_s26, 256, %s958_s12, %s932_s18, %s1650_s15, %s1650_s15, %s1651_s2   ;;  %v926_v52 = vpack.c.bf16 %v922_v42, %v922_v42  ;;  %v915_v43 = vrot.slane %v910_v40, 4  ;;  %v918_v45 = vsel %vm490_vm1, %v910_v40, %v917_v39  ;;  %v920_v46 = vsel %vm490_vm1, %v919_v41, %v902_v33 }
 0x17d   : > { %s2078_s21 = sshll.u32 %s990_s19, 4  ;;  %s438_s24 = scalar_lea.vmem [#allocation13], %s1962_s1  ;;  %v924_v47 = vpack.c.bf16 %v918_v45, %v918_v45  ;;  %v925_v48 = vpack.c.bf16 %v920_v46, %v920_v46  ;;  %s994_s21 = int_to_ptr.hbm [resolvable:$true] %s2078_s21 }
 0x17e   : > { %s991_s4 = sshll.u32 %s438_s24, 4  ;;  %930 = vst.msk [vmem:[%s438_s24 + $0xc] sm:$0xf] %vm604_vm2, %v926_v52  ;;  %v916_v49 = vsel %vm490_vm1, %v915_v43, %v898_v34  ;;  %s1558_s26 = sshra.s32 %s994_s21, 4  ;;  %s992_s4 = int_to_ptr.vmem [resolvable:$true] %s991_s4  ;;  %s1559_s26 = int_to_ptr.hbm [resolvable:$true] %s1558_s26 }
 0x17f   : > { %v923_v50 = vpack.c.bf16 %v916_v49, %v916_v49  ;;  %928 = vst.msk [vmem:[%s438_s24 + $0x4] sm:$0xf] %vm604_vm2, %v924_v47  ;;  %s1560_s1 = scalar_lea.hbm %s1559_s26, 16  ;;  %s1564_s18 = scalar_lea.hbm %s2135_s9, 32 }
 0x180   : > { %929 = vst.msk [vmem:[%s438_s24 + $0x8] sm:$0xf] %vm604_vm2, %v925_v48  ;;  %p1561_p10 = scmp.ne.s32.totalorder %s1559_s26, %s1560_s1  ;;  %p1565_p13 = scmp.lt.s32.totalorder %s1559_s26, %s2135_s9 }
 0x181   : > { %927 = vst.msk [vmem:[%s438_s24] sm:$0xf] %vm604_vm2, %v923_v50  ;;  %p1566_p0 = scmp.lt.s32.totalorder %s1564_s18, %s1560_s1 }
 0x182   : > { %p1562_p11 = pnand %p1561_p10, %p1791_p4 }
 0x183   : > { %p1567_p2 = por %p1566_p0, %p1565_p13 }
 0x184   : > { %p1563_p12 = pneg %p1562_p11 }
 0x186   : > { %p1568_p5 = pnand %p1567_p2, %p1563_p12 }
 0x188   : > { %1571 = shalt.err (!%p1568_p5)
}
 0x189   : > { %1254 = dma.vmem_to_hbm [thread:$0]  (%p1791_p4), %s992_s4, 256, %s994_s21, %s2021_s23, %s1650_s15, %s1650_s15, %s1651_s2  }
 0x18a PF: > { %s1008_s25 = sand.u32 1, %s1618_s30   ;;  %p1273_p8 = pnand %p1180_p6, %p1799_p7 }
 0x18b   : > { %s1009_s22 = scalar_lea.sflag [#allocation4], %s1008_s25 }
 0x18c   : > { %p1274_p1 = pneg %p1273_p8 }
 0x18e   : > { %1609 = dma.done.wait (%p1274_p1), %s1009_s22, 256  }
 0x18f   : > { %1611 = vsyncadd (%p1274_p1), %s1009_s22, 4294967040  ;;  %s2155_s17 = sadd.s32 4294967294, %s1638_s14  }
 0x190   : > { %s1018_s27 = sand.u32 1, %s2155_s17  }
 0x191   : > { %s1019_s28 = scalar_lea.sflag [#allocation12], %s1018_s27 }
 0x192   : > { %1613 = dma.done.wait (%p1274_p1), %s1019_s28, 512  }
 0x193   : > { %1615 = vsyncadd (%p1274_p1), %s1019_s28, 4294966784  ;;  %s31_s14 = sadd.s32 1, %s1638_s14   ;;  %s2156_s16 = sld [smem:[#allocation19_spill]] }
 0x194   : > { %p28_p4 = scmp.ge.s32.totalorder %s31_s14, 4   ;;  %s2157_s30 = smov %s1622_s10 }
 0x195   : > { %s2158_s10 = smov %s1626_s11  ;;  %s2159_s11 = smov %s1797_s29 }
 0x196   : > { %s2160_s12 = smov %s1634_s13  ;;  %30 = sbr.rel (!%p28_p4) target bundleno = 16 (0x10), region = 137 }
 0x199   : > { %s2161_s13 = smov %s2156_s16 }
 0x19b   :  { %1035 = vsyncpa [#allocation3], 1 }
 0x19c   :  { %1037 = vsyncpa [#allocation3 + $0x1], 1 }
 0x19d   :  { %1038 = vsyncpa [#allocation6], 1 }
 0x19e   :  { %1039 = vsyncpa [#allocation9], 1 }
 0x19f   :  { %1040 = vsyncpa [#allocation4], 1 }
 0x1a0   :  { %1042 = vsyncpa [#allocation4 + $0x1], 1 }
 0x1a1   :  { %1043 = vsyncpa [#allocation12], 1 }
 0x1a2   :  { %1045 = vsyncpa [#allocation12 + $0x1], 1 }

// kernel: tpu_custom_call.1
= control target key start
LH: loop header
LB: loop body
LE: loop exit
PB: predicated region body
PF: predicated region fallthrough
CT: control target
= control target key end

     0   :  { %s2126_s0 = inlined_call_operand.hbm [shape: bf16[2,8,32], index: 0, kind: input, shape index: {}]   ;;  %s2127_s1 = inlined_call_operand.hbm [shape: bf16[32,32], index: 1, kind: input, shape index: {}]   ;;  %s2128_s2 = inlined_call_operand.hbm [shape: bf16[32,32], index: 2, kind: input, shape index: {}]   ;;  %s2129_s3 = inlined_call_operand.hbm [shape: bf16[32,32], index: 3, kind: input, shape index: {}]   ;;  %s2130_s4 = inlined_call_operand.vmem [shape: f32[1,32], index: 4, kind: input, shape index: {}]   ;;  %s2131_s5 = inlined_call_operand.vmem [shape: f32[1,32], index: 5, kind: input, shape index: {}]   ;;  %s2132_s6 = inlined_call_operand.vmem [shape: f32[1,32], index: 6, kind: input, shape index: {}]   ;;  %s2133_s7 = inlined_call_operand.hbm [shape: bf16[2,4,8,8], index: 7, kind: output, shape index: {0}]   ;;  %s2134_s8 = inlined_call_operand.hbm [shape: bf16[2,4,8,8], index: 8, kind: output, shape index: {1}]   ;;  %s2135_s9 = inlined_call_operand.hbm [shape: bf16[2,4,8,8], index: 9, kind: output, shape index: {2}]  }
   0x1   :  { %2138 = sst [smem:[#allocation20_spill]] %s2126_s0 }
   0x2   :  { %2139 = sst [smem:[#allocation21_spill]] %s2127_s1 }
   0x3   :  { %2140 = sst [smem:[#allocation22_spill]] %s2128_s2 }
   0x4   :  { %2141 = sst [smem:[#allocation23_spill]] %s2129_s3 }
   0x5   :  { %2142 = sst [smem:[#allocation24_spill]] %s2130_s4 }
   0x6   :  { %15 = vsyncpa [#allocation3], 0 }
   0x7   :  { %17 = vsyncpa [#allocation3 + $0x1], 0 }
   0x8   :  { %18 = vsyncpa [#allocation6], 0 }
   0x9   :  { %19 = vsyncpa [#allocation9], 0 }
   0xa   :  { %20 = vsyncpa [#allocation4], 0 }
   0xb   :  { %22 = vsyncpa [#allocation4 + $0x1], 0 }
   0xc   :  { %23 = vsyncpa [#allocation12], 0 }
   0xd   :  { %25 = vsyncpa [#allocation12 + $0x1], 0  ;;  %s1702_s30 = smov 0   ;;  %s1704_s10 = smov 0  }
   0xe   :  { %s1706_s11 = smov 0   ;;  %s1708_s12 = smov 0  }
   0xf   :  { %s1710_s13 = smov 0   ;;  %s1712_s14 = smov 0  }
  0x10 LB: > { %s1733_s15 = sadd.s32 4294967295, %s1638_s14   ;;  %p1176_p0 = scmp.ge.s32.totalorder %s1638_s14, 1  ;;  %s1638_s14 = sphi %s1712_s14, %s31_s14   ;;  %s1634_s13 = sphi %s1710_s13, %s2161_s13   ;;  %s1630_s12 = sphi %s1708_s12, %s2160_s12   ;;  %s1626_s11 = sphi %s1706_s11, %s2159_s11   ;;  %s1622_s10 = sphi %s1704_s10, %s2158_s10   ;;  %s1618_s30 = sphi %s1702_s30, %s2157_s30  }
  0x11   : > { %p66_p1 = scmp.eq.s32.totalorder %s1733_s15, 0  ;;  %p286_p2 = scmp.lt.s32.totalorder %s1638_s14, 3 }
  0x12   : > { %s2143_s1 = sld [smem:[#allocation21_spill]]  ;;  %s1640_s20 = smov [#allocation5]  }
  0x13   : > { %p1741_p3 = pnand %p1176_p0, %p286_p2  ;;  %s299_s21 = sshll.u32 %s1640_s20, 4  ;;  %s300_s21 = int_to_ptr.vmem [resolvable:$true] %s299_s21 }
  0x14   : > { %p1180_p6 = scmp.ge.s32.totalorder %s1638_s14, 2  ;;  %s2146_s2 = sld [smem:[#allocation22_spill]] }
  0x15   : > { %p1258_p4 = pneg %p1741_p3  ;;  %s1641_s26 = smov 64  }
  0x16   : > { %s1642_s27 = smov 4   ;;  %s1643_s28 = smov [#allocation7]  }
  0x17   : > { %p1749_p5 = pnand %p1258_p4, %p66_p1  ;;  %s313_s29 = sshll.u32 %s1643_s28, 4  ;;  %s314_s29 = int_to_ptr.vmem [resolvable:$true] %s313_s29 }
  0x18   : > { %s297_s18 = sshll.u32 %s2143_s1, 4  ;;  %s2147_s3 = sld [smem:[#allocation23_spill]]  ;;  %s298_s18 = int_to_ptr.hbm [resolvable:$true] %s297_s18 }
  0x19   : > { %1261 = dma.hbm_to_vmem [thread:$0]  (!%p1749_p5), %s298_s18, 256, %s300_s21, [#allocation6], %s1641_s26, %s1641_s26, %s1642_s27  }
  0x1a   : > { %s311_s25 = sshll.u32 %s2146_s2, 4  ;;  %s1644_s23 = smov [#allocation8]   ;;  %s312_s25 = int_to_ptr.hbm [resolvable:$true] %s311_s25 }
  0x1b   : > { %1264 = dma.hbm_to_vmem [thread:$0]  (!%p1749_p5), %s312_s25, 256, %s314_s29, [#allocation6], %s1641_s26, %s1641_s26, %s1642_s27  }
  0x1c   : > { %s327_s24 = sshll.u32 %s1644_s23, 4  ;;  %s2136_s18 = sadd.s32 4294967294, %s1638_s14   ;;  %s328_s24 = int_to_ptr.vmem [resolvable:$true] %s327_s24 }
  0x1d   : > { %s43_s21 = sadd.s32 1, %s1634_s13  ;;  %s52_s28 = sadd.s32 1, %s1626_s11 }
  0x1e   : > { %s325_s20 = sshll.u32 %s2147_s3, 4  ;;  %p45_p7 = scmp.ge.s32.totalorder %s43_s21, 2  ;;  %s326_s20 = int_to_ptr.hbm [resolvable:$true] %s325_s20 }
  0x1f   : > { %1267 = dma.hbm_to_vmem [thread:$0]  (!%p1749_p5), %s326_s20, 256, %s328_s24, [#allocation9], %s1641_s26, %s1641_s26, %s1642_s27  }
  0x20   : > { %p59_p8 = scmp.ne.s32.totalorder %s1626_s11, %s1622_s10  ;;  %p60_p9 = scmp.eq.s32.totalorder %s1638_s14, 0 }
  0x21   : > { %p65_p10 = scmp.ne.s32.totalorder %s1622_s10, %s1618_s30  ;;  %s2163_s21 = smov (%p45_p7, %s43_s21), 0 }
  0x22   : > { %2148 = sst [smem:[#allocation19_spill]] %s2163_s21  ;;  %p1776_p11 = por %p60_p9, %p59_p8 }
  0x23   : > { %p1782_p12 = por %p66_p1, %p65_p10  ;;  %s47_s26 = ssub.s32 %s1634_s13, %s2163_s21 }
  0x24   : > { %p217_p13 = scmp.eq.s32.totalorder %s1733_s15, 1  ;;  %p50_p0 = scmp.eq.s32.totalorder %s47_s26, 0 }
  0x25   : > { %p223_p2 = scmp.eq.s32.totalorder %s2136_s18, 1  ;;  %p1285_p5 = scmp.lt.s32.totalorder %s1638_s14, 2 }
  0x26   : > { %p1791_p4 = por %p217_p13, %p59_p8  ;;  %s350_s17 = sand.u32 1, %s1626_s11  }
  0x27   : > { %s1797_s29 = scalar_select %p50_p0, %s1626_s11, %s52_s28  }
  0x28   : > { %p1799_p7 = por %p223_p2, %p65_p10  ;;  %s1181_s20 = sshll.u32 %s350_s17, 2 }
  0x29   : > { %s1182_s23 = sshll.u32 %s1634_s13, 2  ;;  %s2153_s0 = sld [smem:[#allocation20_spill]] }
  0x2a   : > { %s354_s2 = scalar_lea.vmem [#allocation2], %s1181_s20  ;;  %p1269_p8 = pnand %p1285_p5, %p1776_p11 }
  0x2b   : > { %s363_s18 = sshll.u32 %s354_s2, 4  ;;  %s351_s28 = scalar_lea.sflag [#allocation3], %s350_s17  ;;  %s364_s18 = int_to_ptr.vmem [resolvable:$true] %s363_s18 }
  0x2c   : > { %s1813_s21 = sand.u32 (!%p1741_p3), 1, %s1622_s10  }
  0x2d   : > { %372 = sbr.rel (%p1741_p3) target bundleno = 394 (0x18a), region = 48  ;;  %s1184_s1 = sshll.u32 (!%p1741_p3), %s1813_s21, 2 }
  0x2e   : > { %s378_s20 = scalar_lea.vmem (!%p1741_p3), [#allocation2], %s1184_s1 }
  0x2f   : > { %s359_s26 = scalar_lea.hbm %s2153_s0, %s1182_s23  ;;  %s375_s23 = scalar_lea.sflag (!%p1741_p3), [#allocation3], %s1813_s21 }
  0x30   : > { %s361_s3 = sshll.u32 %s359_s26, 4  ;;  %s362_s3 = int_to_ptr.hbm [resolvable:$true] %s361_s3 }
  0x31   : > { %1271 = dma.hbm_to_vmem [thread:$0]  (!%p1269_p8), %s362_s3, 64, %s364_s18, %s351_s28  }
  0x32   : > { %1597 = dma.done.wait (%p1782_p12), %s375_s23, 64  }
  0x33   : > { %1599 = vsyncadd (%p1782_p12), %s375_s23, 4294967232 }
  0x34   : > { %1601 = dma.done.wait (%p66_p1), [#allocation6], 512  }
  0x35   : > { %1603 = vsyncadd (%p66_p1), [#allocation6], 4294966784 }
  0x36   : > { %1605 = dma.done.wait (%p66_p1), [#allocation9], 256  }
  0x37   : > { %1607 = vsyncadd (%p66_p1), [#allocation9], 4294967040  ;;  %v1230_v0 = vld [vmem:[#allocation7 + $0x8] sm:$0xff]  ;;  %v1232_v1 = vld [vmem:[#allocation5 + $0x8] sm:$0xff]  ;;  %vm461_vm0 = vcmask 261120   ;;  %s2154_s4 = sld [smem:[#allocation24_spill]] }
  0x38   : > { %v1234_v2 = vld [vmem:[#allocation8 + $0x8] sm:$0xff]  ;;  %471 = vmatpush.bf16.msra.mxu0 %v1230_v0  ;;  %635 = vmatpush.bf16.msra.mxu1 %v1232_v1  ;;  %v1229_v3 = vld [vmem:[#allocation7] sm:$0xff]  ;;  %v1231_v4 = vld [vmem:[#allocation5] sm:$0xff]  ;;  %s1645_s17 = smov 120   ;;  %s1646_s24 = smov 112   ;;  %vm490_vm1 = vcmask 1047556  }
  0x39   : > { %796 = vmatpush.bf16.msra.mxu2 %v1234_v2  ;;  %v1233_v5 = vld [vmem:[#allocation8] sm:$0xff]  ;;  %v440_v6 = vld [vmem:[%s378_s20] sm:$0xf]  ;;  %s1647_s26 = smov 104   ;;  %v1648_v24 = vmov 1983009808  }
  0x3a   : > { %v1365_v7 = vld [vmem:[%s2131_s5] ss:$0 sm:$0xff]  ;;  %v495_v25 = vunpack.c.l.s4 %v1648_v24  ;;  %v1649_v39 = vmov 1934713408   ;;  %s1952_s28 = sshll.u32 %s1630_s12, 4  ;;  %s1962_s1 = sshll.u32 %s1813_s21, 4 }
  0x3b   : > { %v1367_v14 = vld [vmem:[%s2132_s6] ss:$0 sm:$0xff]  ;;  %v519_v40 = vunpack.c.l.s4 %v1649_v39  ;;  %s972_s20 = scalar_lea.hbm %s2134_s8, %s1952_s28  ;;  %s936_s2 = sand.u32 1, %s1733_s15   ;;  %vm604_vm2 = vcmask 60416  }
  0x3c   : > { %472 = vmatpush.bf16.msra.mxu0 %v1229_v3  ;;  %636 = vmatpush.bf16.msra.mxu1 %v1231_v4  ;;  %v1845_v36 = vunpack.c.0.s8 %v495_v25  ;;  %s431_s3 = scalar_lea.vmem [#allocation11], %s1962_s1  ;;  %s1980_s18 = sshll.u32 %s972_s20, 4  ;;  %s976_s18 = int_to_ptr.hbm [resolvable:$true] %s1980_s18 }
  0x3d   : > { %797 = vmatpush.bf16.msra.mxu2 %v1233_v5  ;;  %v1366_v8 = vld [vmem:[%s2154_s4] ss:$0 sm:$0xff]  ;;  %v1858_v52 = vunpack.c.0.s8 %v519_v40  ;;  %s973_s19 = sshll.u32 %s431_s3, 4  ;;  %s2021_s23 = scalar_lea.sflag [#allocation12], %s936_s2  ;;  %s1997_s19 = int_to_ptr.vmem [resolvable:$true] %s973_s19 }
  0x3e   : > { %s1502_s20 = sshra.s32 %s976_s18, 4  ;;  %s1503_s20 = int_to_ptr.hbm [resolvable:$true] %s1502_s20 }
  0x3f   : > { %1199 = vmatmul.msk.bf16.vlgmr.msra.gmra.mxu0 %vm461_vm0, %v440_v6  ;;  %1208 = vmatmul.msk.bf16.vlgmr.msra.gmra.mxu1 %vm461_vm0, %v440_v6  ;;  %p1509_p10 = scmp.lt.s32.totalorder %s1503_s20, %s2134_s8 }
  0x40   : > { %1217 = vmatmul.msk.bf16.vlgmr.msra.gmra.mxu2 %vm461_vm0, %v440_v6 }
  0xbc   : > { %v474_v9 = vpop.f32.mrf.mxu0  ;;  %v638_v10 = vpop.f32.mrf.mxu1 }
  0xbd   : > { %v475_v11 = vadd.f32 %v1365_v7, %v474_v9  ;;  %v639_v12 = vadd.f32 %v1366_v8, %v638_v10 }
  0xbf   : > { %v478_v13 = vmul.f32 0.35355338, %v475_v11  ;;  %v654_v31 = vrot.slane %v639_v12, 4 }
  0xc1   : > { %v1355_v15 = vpack.i.bf16 %v478_v13, %v639_v12  ;;  %v492_v30 = vrot.slane %v478_v13, 4 }
  0xc3   : > { %v799_v16 = vpop.f32.mrf.mxu2  ;;  %1356 = vrot.lane.b32.xlu1 %v1355_v15, %s1645_s17  ;;  %1351 = vrot.lane.b32.xlu0 %v1355_v15, %s1646_s24 }
  0xc4   : > { %v1838_v17 = vadd.f32 %v1367_v14, %v799_v16  ;;  %v476_v18 = vpop.f32.mrf.mxu0  ;;  %v640_v19 = vpop.f32.mrf.mxu1 }
  0xc6   : > { %804 = vrot.lane.b32.xlu2 %v1838_v17, %s1645_s17  ;;  %v815_v48 = vrot.slane %v1838_v17, 4  ;;  %s954_s17 = scalar_lea.hbm %s2133_s7, %s1952_s28 }
  0xc7   : > { %s2013_s12 = sshll.u32 %s954_s17, 4  ;;  %s1508_s17 = scalar_lea.hbm %s2134_s8, 32  ;;  %s958_s12 = int_to_ptr.hbm [resolvable:$true] %s2013_s12 }
  0xcb   : > { %v801_v20 = vpop.f32.mrf.mxu2  ;;  %1361 = vrot.lane.b32.xlu1 %v1355_v15, %s1647_s26  ;;  %807 = vrot.lane.b32.xlu0 %v1838_v17, %s1646_s24  ;;  %s2010_s24 = scalar_lea.vmem [#allocation10], %s1962_s1 }
  0xce   : > { %810 = vrot.lane.b32.xlu2 %v1838_v17, %s1647_s26  ;;  %s955_s26 = sshll.u32 %s2010_s24, 4  ;;  %s956_s26 = int_to_ptr.vmem [resolvable:$true] %s955_s26 }
 0x120   : > { %v805_v21 = vpop.permute.xlu2 %804 }
 0x121   : > { %v827_v32 = vrot.slane %v805_v21, 4 }
 0x128   : > { %v811_v22 = vpop.permute.xlu2 %810 }
 0x129   : > { %v825_v23 = vrot.slane %v811_v22, 4  ;;  %v828_v47 = vsel %vm490_vm1, %v811_v22, %v827_v32 }
 0x12a   : > { %v1862_v59 = vperm.slane %v828_v47, %v1845_v36 }
 0x12b   : > { %v826_v33 = vsel %vm490_vm1, %v825_v23, %v805_v21 }
 0x12c   : > { %v1850_v44 = vperm.slane %v826_v33, %v1845_v36 }
 0x12e   : > { %v837_v60 = vrot.slane %v1850_v44, 4 }
 0x135   : > { %v1357_v26 = vpop.permute.xlu1 %1356  ;;  %v1352_v27 = vpop.permute.xlu0 %1351 }
 0x136   : > { %v1354_v28 = vunpack.i.h.bf16 %v1352_v27  ;;  %v1353_v29 = vunpack.i.l.bf16 %v1352_v27  ;;  %v1359_v37 = vunpack.i.h.bf16 %v1357_v26  ;;  %v1358_v41 = vunpack.i.l.bf16 %v1357_v26 }
 0x138   : > { %v489_v34 = vrot.slane %v1354_v28, 4  ;;  %v493_v35 = vsel %vm490_vm1, %v1354_v28, %v492_v30  ;;  %v652_v38 = vrot.slane %v1353_v29, 4  ;;  %v655_v43 = vsel %vm490_vm1, %v1353_v29, %v654_v31 }
 0x139   : > { %v501_v45 = vperm.slane %v493_v35, %v1845_v36  ;;  %v504_v49 = vrot.slane %v1359_v37, 4  ;;  %v663_v51 = vperm.slane %v655_v43, %v1845_v36  ;;  %v666_v55 = vrot.slane %v1358_v41, 4 }
 0x13a   : > { %v491_v42 = vsel %vm490_vm1, %v489_v34, %v478_v13  ;;  %v653_v46 = vsel %vm490_vm1, %v652_v38, %v639_v12 }
 0x13b   : > { %v497_v50 = vperm.slane %v491_v42, %v1845_v36  ;;  %v659_v56 = vperm.slane %v653_v46, %v1845_v36  ;;  %v528_v61 = vrot.slane %v501_v45, 4  ;;  %v690_v4 = vrot.slane %v663_v51, 4 }
 0x13d   : > { %v1362_v53 = vpop.permute.xlu1 %1361  ;;  %v808_v54 = vpop.permute.xlu0 %807  ;;  %v516_v3 = vrot.slane %v497_v50, 4  ;;  %v678_v7 = vrot.slane %v659_v56, 4 }
 0x13e   : > { %v1364_v57 = vunpack.i.h.bf16 %v1362_v53  ;;  %v1363_v58 = vunpack.i.l.bf16 %v1362_v53  ;;  %v813_v62 = vrot.slane %v808_v54, 4  ;;  %v1872_v10 = vsel %vm490_vm1, %v808_v54, %v815_v48 }
 0x140   : > { %v502_v63 = vrot.slane %v1364_v57, 4  ;;  %v505_v0 = vsel %vm490_vm1, %v1364_v57, %v504_v49  ;;  %v664_v1 = vrot.slane %v1363_v58, 4  ;;  %v667_v2 = vsel %vm490_vm1, %v1363_v58, %v666_v55 }
 0x141   : > { %v513_v5 = vperm.slane %v505_v0, %v1845_v36  ;;  %v675_v6 = vperm.slane %v667_v2, %v1845_v36  ;;  %v814_v19 = vsel %vm490_vm1, %v813_v62, %v1838_v17 }
 0x142   : > { %v503_v8 = vsel %vm490_vm1, %v502_v63, %v1359_v37  ;;  %v665_v9 = vsel %vm490_vm1, %v664_v1, %v1358_v41  ;;  %v820_v63 = vperm.slane %v814_v19, %v1845_v36 }
 0x143   : > { %v509_v11 = vperm.slane %v503_v8, %v1845_v36  ;;  %v526_v12 = vrot.slane %v513_v5, 4  ;;  %v529_v13 = vsel %vm490_vm1, %v513_v5, %v528_v61  ;;  %v671_v14 = vperm.slane %v665_v9, %v1845_v36 }
 0x144   : > { %v537_v15 = vperm.slane %v529_v13, %v1858_v52  ;;  %v688_v16 = vrot.slane %v675_v6, 4  ;;  %v691_v18 = vsel %vm490_vm1, %v675_v6, %v690_v4 }
 0x145   : > { %v514_v20 = vrot.slane %v509_v11, 4  ;;  %v517_v21 = vsel %vm490_vm1, %v509_v11, %v516_v3  ;;  %v527_v22 = vsel %vm490_vm1, %v526_v12, %v501_v45  ;;  %v676_v23 = vrot.slane %v671_v14, 4 }
 0x146   : > { %v525_v24 = vperm.slane %v517_v21, %v1858_v52  ;;  %v533_v25 = vperm.slane %v527_v22, %v1858_v52  ;;  %v544_v26 = vrot.slane %v537_v15, 4  ;;  %v679_v27 = vsel %vm490_vm1, %v671_v14, %v678_v7 }
 0x147   : > { %v515_v28 = vsel %vm490_vm1, %v514_v20, %v497_v50  ;;  %v677_v29 = vsel %vm490_vm1, %v676_v23, %v659_v56  ;;  %v687_v30 = vperm.slane %v679_v27, %v1858_v52  ;;  %v689_v17 = vsel %vm490_vm1, %v688_v16, %v663_v51 }
 0x148   : > { %v521_v31 = vperm.slane %v515_v28, %v1858_v52  ;;  %v540_v32 = vrot.slane %v525_v24, 4  ;;  %v542_v33 = vrot.slane %v533_v25, 4  ;;  %v545_v34 = vsel %vm490_vm1, 0.0, %v544_v26 }
 0x149   : > { %v557_v35 = vsel %vm490_vm1, %v544_v26, %v533_v25  ;;  %v562_v37 = vrot.slane %v545_v34, 4  ;;  %v683_v38 = vperm.slane %v677_v29, %v1858_v52  ;;  %v695_v39 = vperm.slane %v689_v17, %v1858_v52 }
 0x14a   : > { %v538_v40 = vrot.slane %v521_v31, 4  ;;  %v541_v41 = vsel %vm490_vm1, 0.0, %v540_v32  ;;  %v543_v42 = vsel %vm490_vm1, 0.0, %v542_v33  ;;  %v546_v43 = vsel %vm490_vm1, %v540_v32, %v521_v31 }
 0x14b   : > { %v550_v45 = vperm.slane %v546_v43, %v1845_v36  ;;  %v551_v46 = vrot.slane %v541_v41, 4  ;;  %v561_v47 = vperm.slane %v557_v35, %v1845_v36  ;;  %v563_v48 = vsel %vm490_vm1, %v562_v37, %v543_v42 }
 0x14c   : > { %v539_v49 = vsel %vm490_vm1, 0.0, %v538_v40  ;;  %v567_v50 = vperm.slane %v563_v48, %v1845_v36  ;;  %v699_v51 = vperm.slane %v691_v18, %v1858_v52  ;;  %v700_v53 = vrot.slane %v683_v38, 4 }
 0x14d   : > { %v552_v54 = vsel %vm490_vm1, %v551_v46, %v539_v49  ;;  %v570_v55 = vrot.slane %v550_v45, 4  ;;  %v582_v56 = vrot.slane %v561_v47, 4  ;;  %v702_v57 = vrot.slane %v687_v30, 4 }
 0x14e   : > { %v556_v58 = vperm.slane %v552_v54, %v1845_v36  ;;  %v580_v61 = vrot.slane %v567_v50, 4  ;;  %v704_v62 = vrot.slane %v695_v39, 4  ;;  %v706_v2 = vrot.slane %v699_v51, 4 }
 0x14f   : > { %v583_v0 = vsel %vm490_vm1, %v567_v50, %v582_v56  ;;  %v703_v1 = vsel %vm490_vm1, 0.0, %v702_v57  ;;  %v708_v3 = vsel %vm490_vm1, %v702_v57, %v683_v38  ;;  %v701_v11 = vsel %vm490_vm1, 0.0, %v700_v53 }
 0x150   : > { %v568_v4 = vrot.slane %v556_v58, 4  ;;  %v571_v5 = vsel %vm490_vm1, %v556_v58, %v570_v55  ;;  %v581_v6 = vsel %vm490_vm1, %v580_v61, %v561_v47  ;;  %v591_v7 = vperm.slane %v583_v0, %v1858_v52 }
 0x151   : > { %v579_v8 = vperm.slane %v571_v5, %v1858_v52  ;;  %v587_v9 = vperm.slane %v581_v6, %v1858_v52  ;;  %v707_v12 = vsel %vm490_vm1, 0.0, %v706_v2  ;;  %v705_v15 = vsel %vm490_vm1, 0.0, %v704_v62 }
 0x152   : > { %v569_v13 = vsel %vm490_vm1, %v568_v4, %v550_v45  ;;  %v596_v14 = vrot.slane %v591_v7, 4  ;;  %v713_v16 = vrot.slane %v703_v1, 4  ;;  %v712_v20 = vperm.slane %v708_v3, %v1845_v36 }
 0x153   : > { %v575_v18 = vperm.slane %v569_v13, %v1858_v52  ;;  %v592_v19 = vrot.slane %v587_v9, 4  ;;  %v719_v21 = vsel %vm490_vm1, %v706_v2, %v695_v39  ;;  %v724_v24 = vrot.slane %v707_v12, 4 }
 0x154   : > { %v714_v22 = vsel %vm490_vm1, %v713_v16, %v701_v11  ;;  %v723_v23 = vperm.slane %v719_v21, %v1845_v36  ;;  %v849_v25 = vrot.slane %v1862_v59, 4  ;;  %v824_v26 = vperm.slane %v1872_v10, %v1845_v36 }
 0x155   : > { %v838_v27 = vsel %vm490_vm1, %v837_v60, %v820_v63  ;;  %v1931_v28 = vsel %vm490_vm1, %v596_v14, %v579_v8  ;;  %v598_v29 = vrot.slane %v579_v8, 4  ;;  %v718_v30 = vperm.slane %v714_v22, %v1845_v36 }
 0x156   : > { %v725_v17 = vsel %vm490_vm1, %v724_v24, %v705_v15  ;;  %v1936_v31 = vsel %vm490_vm1, %v592_v19, %v575_v18  ;;  %v732_v33 = vrot.slane %v712_v20, 4  ;;  %v744_v34 = vrot.slane %v723_v23, 4 }
 0x157   : > { %v729_v32 = vperm.slane %v725_v17, %v1845_v36  ;;  %v594_v10 = vrot.slane %v575_v18, 4  ;;  %v730_v35 = vrot.slane %v718_v30, 4  ;;  %v839_v37 = vrot.slane %v820_v63, 4 }
 0x158   : > { %v844_v60 = vperm.slane %v838_v27, %v1858_v52  ;;  %v733_v38 = vsel %vm490_vm1, %v718_v30, %v732_v33  ;;  %v850_v41 = vsel %vm490_vm1, %v849_v25, %v824_v26  ;;  %v851_v50 = vrot.slane %v824_v26, 4 }
 0x159   : > { %v742_v39 = vrot.slane %v729_v32, 4  ;;  %v745_v40 = vsel %vm490_vm1, %v729_v32, %v744_v34  ;;  %v731_v42 = vsel %vm490_vm1, %v730_v35, %v712_v20  ;;  %v741_v43 = vperm.slane %v733_v38, %v1858_v52 }
 0x15a   : > { %v753_v45 = vperm.slane %v745_v40, %v1858_v52  ;;  %v840_v46 = vsel %vm490_vm1, %v1850_v44, %v839_v37  ;;  %v737_v47 = vperm.slane %v731_v42, %v1858_v52  ;;  %v856_v55 = vperm.slane %v850_v41, %v1858_v52 }
 0x15b   : > { %v743_v48 = vsel %vm490_vm1, %v742_v39, %v723_v23  ;;  %v848_v49 = vperm.slane %v840_v46, %v1858_v52  ;;  %v760_v54 = vrot.slane %v741_v43, 4  ;;  %v1957_v56 = vsel %vm490_vm1, %v591_v7, %v598_v29 }
 0x15c   : > { %v749_v51 = vperm.slane %v743_v48, %v1858_v52  ;;  %v758_v53 = vrot.slane %v753_v45, 4  ;;  %v756_v44 = vrot.slane %v737_v47, 4  ;;  %v852_v57 = vsel %vm490_vm1, %v1862_v59, %v851_v50 }
 0x15d   : > { %v863_v58 = vrot.slane %v848_v49, 4  ;;  %v860_v63 = vperm.slane %v852_v57, %v1858_v52  ;;  %v861_v0 = vrot.slane %v844_v60, 4  ;;  %v1971_v1 = vsel %vm490_vm1, %v587_v9, %v594_v10 }
 0x15e   : > { %v754_v61 = vrot.slane %v749_v51, 4  ;;  %v759_v62 = vsel %vm490_vm1, %v758_v53, %v741_v43  ;;  %v757_v2 = vsel %vm490_vm1, %v749_v51, %v756_v44  ;;  %v761_v59 = vsel %vm490_vm1, %v753_v45, %v760_v54 }
 0x15f   : > { %v764_v3 = vpack.c.bf16 %v759_v62, %v759_v62  ;;  %v763_v5 = vpack.c.bf16 %v757_v2, %v757_v2  ;;  %v864_v6 = vsel %vm490_vm1, 0.0, %v863_v58  ;;  %v865_v7 = vrot.slane %v856_v55, 4 }
 0x160   : > { %v755_v4 = vsel %vm490_vm1, %v754_v61, %v737_v47  ;;  %v867_v11 = vrot.slane %v860_v63, 4  ;;  %v869_v12 = vsel %vm490_vm1, %v863_v58, %v844_v60  ;;  %v874_v13 = vrot.slane %v864_v6, 4 }
 0x161   : > { %v762_v8 = vpack.c.bf16 %v755_v4, %v755_v4  ;;  %v765_v9 = vpack.c.bf16 %v761_v59, %v761_v59  ;;  %v862_v14 = vsel %vm490_vm1, 0.0, %v861_v0  ;;  %v873_v15 = vperm.slane %v869_v12, %v1845_v36  ;;  %767 = vst.msk [vmem:[%s431_s3 + $0x4] sm:$0xf] %vm604_vm2, %v763_v5 }
 0x162   : > { %v600_v16 = vpack.c.bf16 %v1936_v31, %v1936_v31  ;;  %v868_v18 = vsel %vm490_vm1, 0.0, %v867_v11  ;;  %v875_v19 = vsel %vm490_vm1, %v874_v13, %v862_v14  ;;  %v880_v20 = vsel %vm490_vm1, %v867_v11, %v856_v55  ;;  %768 = vst.msk [vmem:[%s431_s3 + $0x8] sm:$0xf] %vm604_vm2, %v764_v3 }
 0x163   : > { %766 = vst.msk [vmem:[%s431_s3] sm:$0xf] %vm604_vm2, %v762_v8  ;;  %v879_v21 = vperm.slane %v875_v19, %v1845_v36  ;;  %v884_v22 = vperm.slane %v880_v20, %v1845_v36  ;;  %v885_v23 = vrot.slane %v868_v18, 4  ;;  %v893_v24 = vrot.slane %v873_v15, 4 }
 0x164   : > { %v601_v25 = vpack.c.bf16 %v1971_v1, %v1971_v1  ;;  %v602_v26 = vpack.c.bf16 %v1931_v28, %v1931_v28  ;;  %v866_v27 = vsel %vm490_vm1, 0.0, %v865_v7  ;;  %769 = vst.msk [vmem:[%s431_s3 + $0xc] sm:$0xf] %vm604_vm2, %v765_v9  ;;  %v603_v28 = vpack.c.bf16 %v1957_v56, %v1957_v56  ;;  %s1504_s3 = scalar_lea.hbm %s1503_s20, 16 }
 0x165   : > { %v886_v29 = vsel %vm490_vm1, %v885_v23, %v866_v27  ;;  %v891_v30 = vrot.slane %v879_v21, 4  ;;  %v894_v17 = vsel %vm490_vm1, %v879_v21, %v893_v24  ;;  %v905_v31 = vrot.slane %v884_v22, 4  ;;  %p1505_p1 = scmp.ne.s32.totalorder %s1503_s20, %s1504_s3  ;;  %p1510_p11 = scmp.lt.s32.totalorder %s1508_s17, %s1504_s3 }
 0x166   : > { %v890_v32 = vperm.slane %v886_v29, %v1845_v36  ;;  %v902_v33 = vperm.slane %v894_v17, %v1858_v52 }
 0x167   : > { %p1506_p3 = pnand %p1505_p1, %p1791_p4  ;;  %p1511_p12 = por %p1510_p11, %p1509_p10 }
 0x169   : > { %p1507_p9 = pneg %p1506_p3 }
 0x16b   : > { %p1512_p13 = pnand %p1511_p12, %p1507_p9 }
 0x16d   : > { %1515 = shalt.err (!%p1512_p13)
}
 0x16e   : > { %s1650_s15 = smov 64   ;;  %s1651_s2 = smov 4   ;;  %v892_v36 = vsel %vm490_vm1, %v891_v30, %v873_v15  ;;  %605 = vst.msk [vmem:[%s2010_s24] sm:$0xf] %vm604_vm2, %v600_v16  ;;  %v903_v10 = vrot.slane %v890_v32, 4  ;;  %v906_v35 = vsel %vm490_vm1, %v890_v32, %v905_v31  ;;  %v921_v37 = vrot.slane %v902_v33, 4 }
 0x16f   : > { %1253 = dma.vmem_to_hbm [thread:$0]  (%p1791_p4), %s1997_s19, 256, %s976_s18, %s2021_s23, %s1650_s15, %s1650_s15, %s1651_s2   ;;  %v898_v34 = vperm.slane %v892_v36, %v1858_v52  ;;  %v914_v60 = vperm.slane %v906_v35, %v1858_v52 }
 0x170   : > { %606 = vst.msk [vmem:[%s2010_s24 + $0x4] sm:$0xf] %vm604_vm2, %v601_v25  ;;  %v904_v38 = vsel %vm490_vm1, %v903_v10, %v884_v22  ;;  %s990_s19 = scalar_lea.hbm %s2135_s9, %s1952_s28  ;;  %s932_s18 = scalar_lea.sflag [#allocation4], %s1813_s21 }
 0x171   : > { %607 = vst.msk [vmem:[%s2010_s24 + $0x8] sm:$0xf] %vm604_vm2, %v602_v26  ;;  %v917_v39 = vrot.slane %v898_v34, 4  ;;  %v910_v40 = vperm.slane %v904_v38, %v1858_v52  ;;  %v919_v41 = vrot.slane %v914_v60, 4  ;;  %v922_v42 = vsel %vm490_vm1, %v914_v60, %v921_v37  ;;  %s1530_s20 = sshra.s32 %s958_s12, 4  ;;  %s1536_s17 = scalar_lea.hbm %s2133_s7, 32  ;;  %s1531_s20 = int_to_ptr.hbm [resolvable:$true] %s1530_s20 }
 0x172   : > { %608 = vst.msk [vmem:[%s2010_s24 + $0xc] sm:$0xf] %vm604_vm2, %v603_v28  ;;  %s1532_s3 = scalar_lea.hbm %s1531_s20, 16  ;;  %p1537_p8 = scmp.lt.s32.totalorder %s1531_s20, %s2133_s7 }
 0x173   : > { %p1533_p0 = scmp.ne.s32.totalorder %s1531_s20, %s1532_s3  ;;  %p1538_p1 = scmp.lt.s32.totalorder %s1536_s17, %s1532_s3 }
 0x175   : > { %p1534_p2 = pnand %p1533_p0, %p1791_p4  ;;  %p1539_p3 = por %p1538_p1, %p1537_p8 }
 0x177   : > { %p1535_p5 = pneg %p1534_p2 }
 0x179   : > { %p1540_p9 = pnand %p1539_p3, %p1535_p5 }
 0x17b   : > { %1543 = shalt.err (!%p1540_p9)
}
 0x17c   : > { %1252 = dma.vmem_to_hbm [thread:$0]  (%p1791_p4), %s956_s26, 256, %s958_s12, %s932_s18, %s1650_s15, %s1650_s15, %s1651_s2   ;;  %v926_v52 = vpack.c.bf16 %v922_v42, %v922_v42  ;;  %v915_v43 = vrot.slane %v910_v40, 4  ;;  %v918_v45 = vsel %vm490_vm1, %v910_v40, %v917_v39  ;;  %v920_v46 = vsel %vm490_vm1, %v919_v41, %v902_v33 }
 0x17d   : > { %s2078_s21 = sshll.u32 %s990_s19, 4  ;;  %s438_s24 = scalar_lea.vmem [#allocation13], %s1962_s1  ;;  %v924_v47 = vpack.c.bf16 %v918_v45, %v918_v45  ;;  %v925_v48 = vpack.c.bf16 %v920_v46, %v920_v46  ;;  %s994_s21 = int_to_ptr.hbm [resolvable:$true] %s2078_s21 }
 0x17e   : > { %s991_s4 = sshll.u32 %s438_s24, 4  ;;  %930 = vst.msk [vmem:[%s438_s24 + $0xc] sm:$0xf] %vm604_vm2, %v926_v52  ;;  %v916_v49 = vsel %vm490_vm1, %v915_v43, %v898_v34  ;;  %s1558_s26 = sshra.s32 %s994_s21, 4  ;;  %s992_s4 = int_to_ptr.vmem [resolvable:$true] %s991_s4  ;;  %s1559_s26 = int_to_ptr.hbm [resolvable:$true] %s1558_s26 }
 0x17f   : > { %v923_v50 = vpack.c.bf16 %v916_v49, %v916_v49  ;;  %928 = vst.msk [vmem:[%s438_s24 + $0x4] sm:$0xf] %vm604_vm2, %v924_v47  ;;  %s1560_s1 = scalar_lea.hbm %s1559_s26, 16  ;;  %s1564_s18 = scalar_lea.hbm %s2135_s9, 32 }
 0x180   : > { %929 = vst.msk [vmem:[%s438_s24 + $0x8] sm:$0xf] %vm604_vm2, %v925_v48  ;;  %p1561_p10 = scmp.ne.s32.totalorder %s1559_s26, %s1560_s1  ;;  %p1565_p13 = scmp.lt.s32.totalorder %s1559_s26, %s2135_s9 }
 0x181   : > { %927 = vst.msk [vmem:[%s438_s24] sm:$0xf] %vm604_vm2, %v923_v50  ;;  %p1566_p0 = scmp.lt.s32.totalorder %s1564_s18, %s1560_s1 }
 0x182   : > { %p1562_p11 = pnand %p1561_p10, %p1791_p4 }
 0x183   : > { %p1567_p2 = por %p1566_p0, %p1565_p13 }
 0x184   : > { %p1563_p12 = pneg %p1562_p11 }
 0x186   : > { %p1568_p5 = pnand %p1567_p2, %p1563_p12 }
 0x188   : > { %1571 = shalt.err (!%p1568_p5)
}
 0x189   : > { %1254 = dma.vmem_to_hbm [thread:$0]  (%p1791_p4), %s992_s4, 256, %s994_s21, %s2021_s23, %s1650_s15, %s1650_s15, %s1651_s2  }
 0x18a PF: > { %s1008_s25 = sand.u32 1, %s1618_s30   ;;  %p1273_p8 = pnand %p1180_p6, %p1799_p7 }
 0x18b   : > { %s1009_s22 = scalar_lea.sflag [#allocation4], %s1008_s25 }
 0x18c   : > { %p1274_p1 = pneg %p1273_p8 }
 0x18e   : > { %1609 = dma.done.wait (%p1274_p1), %s1009_s22, 256  }
 0x18f   : > { %1611 = vsyncadd (%p1274_p1), %s1009_s22, 4294967040  ;;  %s2155_s17 = sadd.s32 4294967294, %s1638_s14  }
 0x190   : > { %s1018_s27 = sand.u32 1, %s2155_s17  }
 0x191   : > { %s1019_s28 = scalar_lea.sflag [#allocation12], %s1018_s27 }
 0x192   : > { %1613 = dma.done.wait (%p1274_p1), %s1019_s28, 512  }
 0x193   : > { %1615 = vsyncadd (%p1274_p1), %s1019_s28, 4294966784  ;;  %s31_s14 = sadd.s32 1, %s1638_s14   ;;  %s2156_s16 = sld [smem:[#allocation19_spill]] }
 0x194   : > { %p28_p4 = scmp.ge.s32.totalorder %s31_s14, 4   ;;  %s2157_s30 = smov %s1622_s10 }
 0x195   : > { %s2158_s10 = smov %s1626_s11  ;;  %s2159_s11 = smov %s1797_s29 }
 0x196   : > { %s2160_s12 = smov %s1634_s13  ;;  %30 = sbr.rel (!%p28_p4) target bundleno = 16 (0x10), region = 137 }
 0x199   : > { %s2161_s13 = smov %s2156_s16 }
 0x19b   :  { %1035 = vsyncpa [#allocation3], 1 }
 0x19c   :  { %1037 = vsyncpa [#allocation3 + $0x1], 1 }
 0x19d   :  { %1038 = vsyncpa [#allocation6], 1 }
 0x19e   :  { %1039 = vsyncpa [#allocation9], 1 }
 0x19f   :  { %1040 = vsyncpa [#allocation4], 1 }
 0x1a0   :  { %1042 = vsyncpa [#allocation4 + $0x1], 1 }
 0x1a1   :  { %1043 = vsyncpa [#allocation12], 1 }
 0x1a2   :  { %1045 = vsyncpa [#allocation12 + $0x1], 1 }

</bundles_post_ra>
